<compile_context>
chip_gen: v5e
topology: v5e:2x2
jax: 0.10.0
libtpu: 0.0.40
codegen_flags: <defaults>
</compile_context>

<pallas_src>
import functools

import jax
import jax.numpy as jnp
import numpy as np
from jax.experimental import pallas as pl
from jax.experimental.pallas import tpu as pltpu

# Lane-dense (128-multiple) padded layer widths.
H1, H2, H3, H4 = 384, 256, 128, 128      # real widths 300, 150, 60, 30
OUT_PAD = 128                            # padded action dimension
TIMER_DIM = 10


def policy_kernel(
    x_ref, t_ref,
    w1_ref, b1_ref,
    w2x_ref, w2t_ref, b2_ref,
    w3x_ref, w3t_ref, b3_ref,
    w4x_ref, w4t_ref, b4_ref,
    w5_ref, b5_ref,
    out_ref,
):
    x = x_ref[...].astype(jnp.bfloat16)   # no-op when the producer streams bf16
    t = t_ref[...].astype(jnp.bfloat16)

    # layer 1: in_dim -> 300 (padded to 384), ReLU.
    # Padded columns have zero weight and zero bias -> relu(0) == 0 exactly.
    h = jnp.dot(x, w1_ref[...], preferred_element_type=jnp.float32) + b1_ref[...]
    h = jnp.maximum(h, 0.0)

    # layers 2-4: Linear(cat(h, timer)) == h @ Wh + t @ Wt + b (exact split).
    # Timer dots are done just-in-time so no wide f32 intermediate stays live
    # across layers (minimal vreg pressure / VMEM spills).
    def hidden(h, wx_ref, wt_ref, b_ref):
        z = (jnp.dot(h.astype(jnp.bfloat16), wx_ref[...],
                     preferred_element_type=jnp.float32)
             + jnp.dot(t, wt_ref[...], preferred_element_type=jnp.float32)
             + b_ref[...])
        return jnp.maximum(z, 0.0)

    h = hidden(h, w2x_ref, w2t_ref, b2_ref)   # 300+10 -> 150 (padded 256)
    h = hidden(h, w3x_ref, w3t_ref, b3_ref)   # 150+10 -> 60  (padded 128)
    h = hidden(h, w4x_ref, w4t_ref, b4_ref)   # 60+10  -> 30  (padded 128)

    # output head: 30 -> n_actions, lane-dense padded to 128.
    # Padded columns carry bias -1e9 -> exp underflows to exactly 0 in f32, so the
    # 128-lane softmax equals the softmax over the real n_actions lanes.
    logits = (jnp.dot(h.astype(jnp.bfloat16), w5_ref[...],
                      preferred_element_type=jnp.float32) + b5_ref[...])
    m = jnp.max(logits, axis=1, keepdims=True)
    e = jnp.exp(logits - m)
    out_ref[...] = e / jnp.sum(e, axis=1, keepdims=True)   # exact normalization


def _cdiv(a, b):
    return -(-a // b)


def _round_up(n, m):
    return ((n + m - 1) // m) * m


def _choose_tiling(B, batch_tile):
    """Bounded-padding tiling: pad <= 7 rows + one tile remainder; >= 2 grid steps
    whenever the batch allows it (v7x two-TensorCore sharding + x-DMA pipelining)."""
    B8 = _round_up(max(B, 1), 8)
    n_steps = _cdiv(B8, batch_tile)
    if B8 >= 16:
        n_steps = max(n_steps, 2)
    TB = _round_up(_cdiv(B8, n_steps), 8)
    return TB, TB * n_steps, n_steps


@functools.partial(jax.jit,
                   static_argnames=("n_actions", "batch_tile", "return_padded"))
def policy_forward(x, timer, params, *, n_actions, batch_tile=512,
                   return_padded=False):
    B, in_dim = x.shape
    TB, B_pad, n_steps = _choose_tiling(B, batch_tile)
    if B_pad != B:
        x = jnp.pad(x, ((0, B_pad - B), (0, 0)))
        timer = jnp.pad(timer, ((0, B_pad - B), (0, 0)))

    args = (
        x, timer,
        params["w1"], params["b1"],
        params["w2x"], params["w2t"], params["b2"],
        params["w3x"], params["w3t"], params["b3"],
        params["w4x"], params["w4t"], params["b4"],
        params["w5"], params["b5"],
    )

    def resident(a):
        # full-array block, constant index_map -> VMEM-resident, DMA'd once
        return pl.BlockSpec(a.shape, lambda i: (0,) * a.ndim)

    in_specs = [
        pl.BlockSpec((TB, in_dim), lambda i: (i, 0)),     # x: streamed per batch tile
        pl.BlockSpec((TB, TIMER_DIM), lambda i: (i, 0)),  # timer: streamed per tile
    ] + [resident(a) for a in args[2:]]                   # weights/biases: resident

    out_padded = pl.pallas_call(
        policy_kernel,
        out_shape=jax.ShapeDtypeStruct((B_pad, OUT_PAD), jnp.float32),
        grid=(n_steps,),
        in_specs=in_specs,
        out_specs=pl.BlockSpec((TB, OUT_PAD), lambda i: (i, 0)),
        compiler_params=pltpu.CompilerParams(
            dimension_semantics=("parallel",),
            # Only very large tiles approach the 32 MiB scoped default (v7x note).
            vmem_limit_bytes=(64 << 20) if TB >= 1024 else None),
    )(*args)

    if return_padded:
        # Consumers (e.g. masked categorical sampling) can read the lane-dense
        # padded buffer directly and skip the HBM re-read of the slice below.
        return out_padded
    return out_padded[:B, :n_actions]


def init_params(key, in_dim, n_actions):
    """PyTorch-Linear-style uniform init; weights stored (in, out), bf16.

    The cat-weights are split into activation / timer parts, every layer width is
    padded to a 128-lane multiple with zero weights / zero bias (exact), and the
    output head is padded to 128 lanes with bias -1e9 in the padded columns.
    """
    def linear(key, fan_in, fan_out):
        kw, kb = jax.random.split(key)
        bound = 1.0 / np.sqrt(fan_in)
        w = jax.random.uniform(kw, (fan_in, fan_out), jnp.float32, -bound, bound)
        b = jax.random.uniform(kb, (1, fan_out), jnp.float32, -bound, bound)
        return w, b

    k1, k2, k3, k4, k5 = jax.random.split(key, 5)
    w1, b1 = linear(k1, in_dim, 300)
    w2, b2 = linear(k2, 300 + 10, 150)
    w3, b3 = linear(k3, 150 + 10, 60)
    w4, b4 = linear(k4, 60 + 10, 30)
    w5, b5 = linear(k5, 30, n_actions)

    def pad2(a, rows, cols, fill=0.0):
        out = jnp.full((rows, cols), fill, jnp.float32)
        return out.at[: a.shape[0], : a.shape[1]].set(a)

    bf = lambda a: a.astype(jnp.bfloat16)

    kernel_params = {
        "w1": bf(pad2(w1, in_dim, H1)),
        "b1": pad2(b1, 1, H1),
        "w2x": bf(pad2(w2[:300], H1, H2)),
        "w2t": bf(pad2(w2[300:], TIMER_DIM, H2)),
        "b2": pad2(b2, 1, H2),
        "w3x": bf(pad2(w3[:150], H2, H3)),
        "w3t": bf(pad2(w3[150:], TIMER_DIM, H3)),
        "b3": pad2(b3, 1, H3),
        "w4x": bf(pad2(w4[:60], H3, H4)),
        "w4t": bf(pad2(w4[60:], TIMER_DIM, H4)),
        "b4": pad2(b4, 1, H4),
        "w5": bf(pad2(w5, H4, OUT_PAD)),
        "b5": pad2(b5, 1, OUT_PAD, fill=-1e9),   # keep pad bias in f32 (not bf16)
    }
    ref_params = {
        "w1": bf(w1), "b1": b1, "w2": bf(w2), "b2": b2,
        "w3": bf(w3), "b3": b3, "w4": bf(w4), "b4": b4,
        "w5": bf(w5), "b5": b5,
    }
    return kernel_params, ref_params


def policy_reference(x, timer, p):
    """Plain-JAX reference mirroring the PyTorch forward (explicit concat),
    using the same bf16 weights / bf16 matmul inputs / f32 accumulation."""
    dot16 = lambda a, w: jnp.dot(a.astype(jnp.bfloat16), w,
                                 preferred_element_type=jnp.float32)
    h = jax.nn.relu(dot16(x, p["w1"]) + p["b1"])
    h = jax.nn.relu(dot16(jnp.concatenate([h, timer], axis=1), p["w2"]) + p["b2"])
    h = jax.nn.relu(dot16(jnp.concatenate([h, timer], axis=1), p["w3"]) + p["b3"])
    h = jax.nn.relu(dot16(jnp.concatenate([h, timer], axis=1), p["w4"]) + p["b4"])
    logits = dot16(h, p["w5"]) + p["b5"]
    return jax.nn.softmax(logits, axis=1)


if __name__ == "__main__":
    # Shapes consistent with the module: height=16, width=16, n_layers=5 -> in_dim=1280
    HEIGHT, WIDTH, N_LAYERS = 16, 16, 5
    N_ACTIONS = 6
    IN_DIM = HEIGHT * WIDTH * N_LAYERS

    key = jax.random.PRNGKey(0)
    kx, kt, kp = jax.random.split(key, 3)
    params, ref_params = init_params(kp, IN_DIM, N_ACTIONS)

    # B=2: small demo batch (grid of 1).  B=300: exercises bounded padding (304)
    # and the >=2-step grid used for v7x megacore sharding / DMA pipelining.
    for B in (2, 300):
        kxb = jax.random.fold_in(kx, B)
        ktb = jax.random.fold_in(kt, B)
        # Producer emits bf16 directly (halves the dominant streamed-x HBM traffic);
        # timer stays f32 (cast to bf16 in-kernel, matching the bf16 reference).
        x = jax.random.normal(kxb, (B, IN_DIM), jnp.float32).astype(jnp.bfloat16)
        timer = jax.random.uniform(ktb, (B, TIMER_DIM), jnp.float32, 0.0, 10.0)

        out = jax.block_until_ready(
            policy_forward(x, timer, params, n_actions=N_ACTIONS))
        ref = policy_reference(x, timer, ref_params)

        assert out.shape == (B, N_ACTIONS)
        # bf16 matmuls -> loosened tolerances vs. the bf16 reference
        np.testing.assert_allclose(np.asarray(out), np.asarray(ref),
                                   rtol=2e-2, atol=5e-3)
        # exact softmax divide -> rows sum to 1 tightly
        np.testing.assert_allclose(np.asarray(out).sum(axis=1), np.ones(B),
                                   rtol=0, atol=1e-3)

    print("KERNEL_OK")
</pallas_src>

<mosaic_0001>
module attributes {stable_mosaic.version = 11 : i64} {
  func.func @policy_kernel(%arg0: i32, %arg1: memref<8x1280xbf16, #tpu.memory_space<vmem>>, %arg2: memref<8x10xf32, #tpu.memory_space<vmem>>, %arg3: memref<1280x384xbf16, #tpu.memory_space<vmem>>, %arg4: memref<1x384xf32, #tpu.memory_space<vmem>>, %arg5: memref<384x256xbf16, #tpu.memory_space<vmem>>, %arg6: memref<10x256xbf16, #tpu.memory_space<vmem>>, %arg7: memref<1x256xf32, #tpu.memory_space<vmem>>, %arg8: memref<256x128xbf16, #tpu.memory_space<vmem>>, %arg9: memref<10x128xbf16, #tpu.memory_space<vmem>>, %arg10: memref<1x128xf32, #tpu.memory_space<vmem>>, %arg11: memref<128x128xbf16, #tpu.memory_space<vmem>>, %arg12: memref<10x128xbf16, #tpu.memory_space<vmem>>, %arg13: memref<1x128xf32, #tpu.memory_space<vmem>>, %arg14: memref<128x128xbf16, #tpu.memory_space<vmem>>, %arg15: memref<1x128xf32, #tpu.memory_space<vmem>>, %arg16: memref<8x128xf32, #tpu.memory_space<vmem>>) attributes {dimension_semantics = [#tpu.dimension_semantics<parallel>], iteration_bounds = array<i64: 1>, scalar_prefetch = 0 : i64, scratch_operands = 0 : i64, tpu.core_type = #tpu.core_type<tc>, window_params = [{transform_indices = @transform_0, window_bounds = array<i64: 8, 1280>}, {transform_indices = @transform_1, window_bounds = array<i64: 8, 10>}, {pipeline_mode = #tpu.pipeline_mode<synchronous>, transform_indices = @transform_2, window_bounds = array<i64: 1280, 384>}, {pipeline_mode = #tpu.pipeline_mode<synchronous>, transform_indices = @transform_3, window_bounds = array<i64: 1, 384>}, {pipeline_mode = #tpu.pipeline_mode<synchronous>, transform_indices = @transform_4, window_bounds = array<i64: 384, 256>}, {pipeline_mode = #tpu.pipeline_mode<synchronous>, transform_indices = @transform_5, window_bounds = array<i64: 10, 256>}, {pipeline_mode = #tpu.pipeline_mode<synchronous>, transform_indices = @transform_6, window_bounds = array<i64: 1, 256>}, {pipeline_mode = #tpu.pipeline_mode<synchronous>, transform_indices = @transform_7, window_bounds = array<i64: 256, 128>}, {pipeline_mode = #tpu.pipeline_mode<synchronous>, transform_indices = @transform_8, window_bounds = array<i64: 10, 128>}, {pipeline_mode = #tpu.pipeline_mode<synchronous>, transform_indices = @transform_9, window_bounds = array<i64: 1, 128>}, {pipeline_mode = #tpu.pipeline_mode<synchronous>, transform_indices = @transform_10, window_bounds = array<i64: 128, 128>}, {pipeline_mode = #tpu.pipeline_mode<synchronous>, transform_indices = @transform_11, window_bounds = array<i64: 10, 128>}, {pipeline_mode = #tpu.pipeline_mode<synchronous>, transform_indices = @transform_12, window_bounds = array<i64: 1, 128>}, {pipeline_mode = #tpu.pipeline_mode<synchronous>, transform_indices = @transform_13, window_bounds = array<i64: 128, 128>}, {pipeline_mode = #tpu.pipeline_mode<synchronous>, transform_indices = @transform_14, window_bounds = array<i64: 1, 128>}, {transform_indices = @transform_15, window_bounds = array<i64: 8, 128>}]} {
    %c0 = arith.constant 0 : index
    %c0_0 = arith.constant 0 : index
    %0 = vector.load %arg1[%c0, %c0_0] : memref<8x1280xbf16, #tpu.memory_space<vmem>>, vector<8x1280xbf16>
    %c0_1 = arith.constant 0 : index
    %c0_2 = arith.constant 0 : index
    %1 = vector.load %arg2[%c0_1, %c0_2] : memref<8x10xf32, #tpu.memory_space<vmem>>, vector<8x10xf32>
    %2 = arith.truncf %1 : vector<8x10xf32> to vector<8x10xbf16>
    %c0_3 = arith.constant 0 : index
    %c0_4 = arith.constant 0 : index
    %3 = vector.load %arg3[%c0_3, %c0_4] : memref<1280x384xbf16, #tpu.memory_space<vmem>>, vector<1280x384xbf16>
    %cst = arith.constant dense<0.000000e+00> : vector<8x384xf32>
    %4 = tpu.matmul %0, %3, %cst {dimension_numbers = #tpu.dot_dimension_numbers<[1], [0], [0], [1], [0, 0, 1, 1], [], []>} : vector<8x1280xbf16>, vector<1280x384xbf16>, vector<8x384xf32> -> vector<8x384xf32>
    %c0_5 = arith.constant 0 : index
    %c0_6 = arith.constant 0 : index
    %5 = vector.load %arg4[%c0_5, %c0_6] : memref<1x384xf32, #tpu.memory_space<vmem>>, vector<1x384xf32>
    %6 = vector.broadcast %5 : vector<1x384xf32> to vector<8x384xf32>
    %7 = arith.addf %4, %6 : vector<8x384xf32>
    %cst_7 = arith.constant 0.000000e+00 : f32
    %8 = vector.broadcast %cst_7 : f32 to vector<8x384xf32>
    %9 = arith.maximumf %7, %8 : vector<8x384xf32>
    %10 = arith.truncf %9 : vector<8x384xf32> to vector<8x384xbf16>
    %c0_8 = arith.constant 0 : index
    %c0_9 = arith.constant 0 : index
    %11 = vector.load %arg5[%c0_8, %c0_9] : memref<384x256xbf16, #tpu.memory_space<vmem>>, vector<384x256xbf16>
    %cst_10 = arith.constant dense<0.000000e+00> : vector<8x256xf32>
    %12 = tpu.matmul %10, %11, %cst_10 {dimension_numbers = #tpu.dot_dimension_numbers<[1], [0], [0], [1], [0, 0, 1, 1], [], []>} : vector<8x384xbf16>, vector<384x256xbf16>, vector<8x256xf32> -> vector<8x256xf32>
    %c0_11 = arith.constant 0 : index
    %c0_12 = arith.constant 0 : index
    %13 = vector.load %arg6[%c0_11, %c0_12] : memref<10x256xbf16, #tpu.memory_space<vmem>>, vector<10x256xbf16>
    %cst_13 = arith.constant dense<0.000000e+00> : vector<8x256xf32>
    %14 = tpu.matmul %2, %13, %cst_13 {dimension_numbers = #tpu.dot_dimension_numbers<[1], [0], [0], [1], [0, 0, 1, 1], [], []>} : vector<8x10xbf16>, vector<10x256xbf16>, vector<8x256xf32> -> vector<8x256xf32>
    %15 = arith.addf %12, %14 : vector<8x256xf32>
    %c0_14 = arith.constant 0 : index
    %c0_15 = arith.constant 0 : index
    %16 = vector.load %arg7[%c0_14, %c0_15] : memref<1x256xf32, #tpu.memory_space<vmem>>, vector<1x256xf32>
    %17 = vector.broadcast %16 : vector<1x256xf32> to vector<8x256xf32>
    %18 = arith.addf %15, %17 : vector<8x256xf32>
    %cst_16 = arith.constant 0.000000e+00 : f32
    %19 = vector.broadcast %cst_16 : f32 to vector<8x256xf32>
    %20 = arith.maximumf %18, %19 : vector<8x256xf32>
    %21 = arith.truncf %20 : vector<8x256xf32> to vector<8x256xbf16>
    %c0_17 = arith.constant 0 : index
    %c0_18 = arith.constant 0 : index
    %22 = vector.load %arg8[%c0_17, %c0_18] : memref<256x128xbf16, #tpu.memory_space<vmem>>, vector<256x128xbf16>
    %cst_19 = arith.constant dense<0.000000e+00> : vector<8x128xf32>
    %23 = tpu.matmul %21, %22, %cst_19 {dimension_numbers = #tpu.dot_dimension_numbers<[1], [0], [0], [1], [0, 0, 1, 1], [], []>} : vector<8x256xbf16>, vector<256x128xbf16>, vector<8x128xf32> -> vector<8x128xf32>
    %c0_20 = arith.constant 0 : index
    %c0_21 = arith.constant 0 : index
    %24 = vector.load %arg9[%c0_20, %c0_21] : memref<10x128xbf16, #tpu.memory_space<vmem>>, vector<10x128xbf16>
    %cst_22 = arith.constant dense<0.000000e+00> : vector<8x128xf32>
    %25 = tpu.matmul %2, %24, %cst_22 {dimension_numbers = #tpu.dot_dimension_numbers<[1], [0], [0], [1], [0, 0, 1, 1], [], []>} : vector<8x10xbf16>, vector<10x128xbf16>, vector<8x128xf32> -> vector<8x128xf32>
    %26 = arith.addf %23, %25 : vector<8x128xf32>
    %c0_23 = arith.constant 0 : index
    %c0_24 = arith.constant 0 : index
    %27 = vector.load %arg10[%c0_23, %c0_24] : memref<1x128xf32, #tpu.memory_space<vmem>>, vector<1x128xf32>
    %28 = vector.broadcast %27 : vector<1x128xf32> to vector<8x128xf32>
    %29 = arith.addf %26, %28 : vector<8x128xf32>
    %cst_25 = arith.constant 0.000000e+00 : f32
    %30 = vector.broadcast %cst_25 : f32 to vector<8x128xf32>
    %31 = arith.maximumf %29, %30 : vector<8x128xf32>
    %32 = arith.truncf %31 : vector<8x128xf32> to vector<8x128xbf16>
    %c0_26 = arith.constant 0 : index
    %c0_27 = arith.constant 0 : index
    %33 = vector.load %arg11[%c0_26, %c0_27] : memref<128x128xbf16, #tpu.memory_space<vmem>>, vector<128x128xbf16>
    %cst_28 = arith.constant dense<0.000000e+00> : vector<8x128xf32>
    %34 = tpu.matmul %32, %33, %cst_28 {dimension_numbers = #tpu.dot_dimension_numbers<[1], [0], [0], [1], [0, 0, 1, 1], [], []>} : vector<8x128xbf16>, vector<128x128xbf16>, vector<8x128xf32> -> vector<8x128xf32>
    %c0_29 = arith.constant 0 : index
    %c0_30 = arith.constant 0 : index
    %35 = vector.load %arg12[%c0_29, %c0_30] : memref<10x128xbf16, #tpu.memory_space<vmem>>, vector<10x128xbf16>
    %cst_31 = arith.constant dense<0.000000e+00> : vector<8x128xf32>
    %36 = tpu.matmul %2, %35, %cst_31 {dimension_numbers = #tpu.dot_dimension_numbers<[1], [0], [0], [1], [0, 0, 1, 1], [], []>} : vector<8x10xbf16>, vector<10x128xbf16>, vector<8x128xf32> -> vector<8x128xf32>
    %37 = arith.addf %34, %36 : vector<8x128xf32>
    %c0_32 = arith.constant 0 : index
    %c0_33 = arith.constant 0 : index
    %38 = vector.load %arg13[%c0_32, %c0_33] : memref<1x128xf32, #tpu.memory_space<vmem>>, vector<1x128xf32>
    %39 = vector.broadcast %38 : vector<1x128xf32> to vector<8x128xf32>
    %40 = arith.addf %37, %39 : vector<8x128xf32>
    %cst_34 = arith.constant 0.000000e+00 : f32
    %41 = vector.broadcast %cst_34 : f32 to vector<8x128xf32>
    %42 = arith.maximumf %40, %41 : vector<8x128xf32>
    %43 = arith.truncf %42 : vector<8x128xf32> to vector<8x128xbf16>
    %c0_35 = arith.constant 0 : index
    %c0_36 = arith.constant 0 : index
    %44 = vector.load %arg14[%c0_35, %c0_36] : memref<128x128xbf16, #tpu.memory_space<vmem>>, vector<128x128xbf16>
    %cst_37 = arith.constant dense<0.000000e+00> : vector<8x128xf32>
    %45 = tpu.matmul %43, %44, %cst_37 {dimension_numbers = #tpu.dot_dimension_numbers<[1], [0], [0], [1], [0, 0, 1, 1], [], []>} : vector<8x128xbf16>, vector<128x128xbf16>, vector<8x128xf32> -> vector<8x128xf32>
    %c0_38 = arith.constant 0 : index
    %c0_39 = arith.constant 0 : index
    %46 = vector.load %arg15[%c0_38, %c0_39] : memref<1x128xf32, #tpu.memory_space<vmem>>, vector<1x128xf32>
    %47 = vector.broadcast %46 : vector<1x128xf32> to vector<8x128xf32>
    %48 = arith.addf %45, %47 : vector<8x128xf32>
    %cst_40 = arith.constant dense<0xFF800000> : vector<8xf32>
    %49 = vector.multi_reduction <maximumf>, %48, %cst_40 [1] : vector<8x128xf32> to vector<8xf32>
    %50 = vector.shape_cast %49 : vector<8xf32> to vector<8x1xf32>
    %51 = vector.broadcast %50 : vector<8x1xf32> to vector<8x128xf32>
    %52 = arith.subf %48, %51 : vector<8x128xf32>
    %53 = math.exp %52 : vector<8x128xf32>
    %cst_41 = arith.constant dense<0.000000e+00> : vector<8xf32>
    %54 = vector.multi_reduction <add>, %53, %cst_41 [1] : vector<8x128xf32> to vector<8xf32>
    %55 = vector.shape_cast %54 : vector<8xf32> to vector<8x1xf32>
    %56 = vector.broadcast %55 : vector<8x1xf32> to vector<8x128xf32>
    %57 = arith.divf %53, %56 : vector<8x128xf32>
    %c0_42 = arith.constant 0 : index
    %c0_43 = arith.constant 0 : index
    %58 = vector.load %arg16[%c0_42, %c0_43] : memref<8x128xf32, #tpu.memory_space<vmem>>, vector<8x128xf32>
    tpu.vector_store %arg16[%c0_42, %c0_43], %57 {strides = array<i32>} : memref<8x128xf32, #tpu.memory_space<vmem>>, vector<8x128xf32>,
    return
  }
  func.func @transform_0(%arg0: i32) -> (i32, i32) {
    %c0_i32 = arith.constant 0 : i32
    %c0_i32_0 = arith.constant 0 : i32
    return %arg0, %c0_i32 : i32, i32
  }
  func.func @transform_1(%arg0: i32) -> (i32, i32) {
    %c0_i32 = arith.constant 0 : i32
    %c0_i32_0 = arith.constant 0 : i32
    return %arg0, %c0_i32 : i32, i32
  }
  func.func @transform_2(%arg0: i32) -> (i32, i32) {
    %c0_i32 = arith.constant 0 : i32
    %c0_i32_0 = arith.constant 0 : i32
    %c0_i32_1 = arith.constant 0 : i32
    return %c0_i32, %c0_i32_0 : i32, i32
  }
  func.func @transform_3(%arg0: i32) -> (i32, i32) {
    %c0_i32 = arith.constant 0 : i32
    %c0_i32_0 = arith.constant 0 : i32
    %c0_i32_1 = arith.constant 0 : i32
    return %c0_i32, %c0_i32_0 : i32, i32
  }
  func.func @transform_4(%arg0: i32) -> (i32, i32) {
    %c0_i32 = arith.constant 0 : i32
    %c0_i32_0 = arith.constant 0 : i32
    %c0_i32_1 = arith.constant 0 : i32
    return %c0_i32, %c0_i32_0 : i32, i32
  }
  func.func @transform_5(%arg0: i32) -> (i32, i32) {
    %c0_i32 = arith.constant 0 : i32
    %c0_i32_0 = arith.constant 0 : i32
    %c0_i32_1 = arith.constant 0 : i32
    return %c0_i32, %c0_i32_0 : i32, i32
  }
  func.func @transform_6(%arg0: i32) -> (i32, i32) {
    %c0_i32 = arith.constant 0 : i32
    %c0_i32_0 = arith.constant 0 : i32
    %c0_i32_1 = arith.constant 0 : i32
    return %c0_i32, %c0_i32_0 : i32, i32
  }
  func.func @transform_7(%arg0: i32) -> (i32, i32) {
    %c0_i32 = arith.constant 0 : i32
    %c0_i32_0 = arith.constant 0 : i32
    %c0_i32_1 = arith.constant 0 : i32
    return %c0_i32, %c0_i32_0 : i32, i32
  }
  func.func @transform_8(%arg0: i32) -> (i32, i32) {
    %c0_i32 = arith.constant 0 : i32
    %c0_i32_0 = arith.constant 0 : i32
    %c0_i32_1 = arith.constant 0 : i32
    return %c0_i32, %c0_i32_0 : i32, i32
  }
  func.func @transform_9(%arg0: i32) -> (i32, i32) {
    %c0_i32 = arith.constant 0 : i32
    %c0_i32_0 = arith.constant 0 : i32
    %c0_i32_1 = arith.constant 0 : i32
    return %c0_i32, %c0_i32_0 : i32, i32
  }
  func.func @transform_10(%arg0: i32) -> (i32, i32) {
    %c0_i32 = arith.constant 0 : i32
    %c0_i32_0 = arith.constant 0 : i32
    %c0_i32_1 = arith.constant 0 : i32
    return %c0_i32, %c0_i32_0 : i32, i32
  }
  func.func @transform_11(%arg0: i32) -> (i32, i32) {
    %c0_i32 = arith.constant 0 : i32
    %c0_i32_0 = arith.constant 0 : i32
    %c0_i32_1 = arith.constant 0 : i32
    return %c0_i32, %c0_i32_0 : i32, i32
  }
  func.func @transform_12(%arg0: i32) -> (i32, i32) {
    %c0_i32 = arith.constant 0 : i32
    %c0_i32_0 = arith.constant 0 : i32
    %c0_i32_1 = arith.constant 0 : i32
    return %c0_i32, %c0_i32_0 : i32, i32
  }
  func.func @transform_13(%arg0: i32) -> (i32, i32) {
    %c0_i32 = arith.constant 0 : i32
    %c0_i32_0 = arith.constant 0 : i32
    %c0_i32_1 = arith.constant 0 : i32
    return %c0_i32, %c0_i32_0 : i32, i32
  }
  func.func @transform_14(%arg0: i32) -> (i32, i32) {
    %c0_i32 = arith.constant 0 : i32
    %c0_i32_0 = arith.constant 0 : i32
    %c0_i32_1 = arith.constant 0 : i32
    return %c0_i32, %c0_i32_0 : i32, i32
  }
  func.func @transform_15(%arg0: i32) -> (i32, i32) {
    %c0_i32 = arith.constant 0 : i32
    %c0_i32_0 = arith.constant 0 : i32
    return %arg0, %c0_i32 : i32, i32
  }
}

</mosaic_0001>

<bundles_post_ra>
// kernel: policy_forward.1
= control target key start
LH: loop header
LB: loop body
LE: loop exit
PB: predicated region body
PF: predicated region fallthrough
CT: control target
= control target key end

     0   :  { %20 = vsyncpa [#allocation3], 0  ;;  %s5054_s0 = inlined_call_operand.vmem [shape: bf16[8,1280], index: 0, kind: input, shape index: {}]   ;;  %s5055_s1 = inlined_call_operand.vmem [shape: f32[8,10], index: 1, kind: input, shape index: {}]   ;;  %s5056_s2 = inlined_call_operand.hbm [shape: bf16[1280,384], index: 2, kind: input, shape index: {}]   ;;  %s5057_s3 = inlined_call_operand.vmem [shape: f32[1,384], index: 3, kind: input, shape index: {}]   ;;  %s5058_s4 = inlined_call_operand.hbm [shape: bf16[384,256], index: 4, kind: input, shape index: {}]   ;;  %s5059_s5 = inlined_call_operand.vmem [shape: bf16[10,256], index: 5, kind: input, shape index: {}]   ;;  %s5060_s6 = inlined_call_operand.vmem [shape: f32[1,256], index: 6, kind: input, shape index: {}]   ;;  %s5061_s7 = inlined_call_operand.hbm [shape: bf16[256,128], index: 7, kind: input, shape index: {}]   ;;  %s5062_s8 = inlined_call_operand.vmem [shape: bf16[10,128], index: 8, kind: input, shape index: {}]   ;;  %s5063_s9 = inlined_call_operand.vmem [shape: f32[1,128], index: 9, kind: input, shape index: {}]   ;;  %s5064_s10 = inlined_call_operand.hbm [shape: bf16[128,128], index: 10, kind: input, shape index: {}]   ;;  %s5065_s11 = inlined_call_operand.vmem [shape: bf16[10,128], index: 11, kind: input, shape index: {}]   ;;  %s5066_s12 = inlined_call_operand.vmem [shape: f32[1,128], index: 12, kind: input, shape index: {}]   ;;  %s5067_s13 = inlined_call_operand.hbm [shape: bf16[128,128], index: 13, kind: input, shape index: {}]   ;;  %s5068_s14 = inlined_call_operand.vmem [shape: f32[1,128], index: 14, kind: input, shape index: {}]   ;;  %s5069_s15 = inlined_call_operand.vmem [shape: f32[8,128], index: 15, kind: output, shape index: {}]  }
   0x1   :  { %21 = vsyncpa [#allocation5], 0  ;;  %s46_s20 = sshll.u32 %s5058_s4, 4  ;;  %s47_s20 = int_to_ptr.hbm [resolvable:$true] %s46_s20 }
   0x2   :  { %22 = vsyncpa [#allocation8], 0  ;;  %s4770_s21 = smov [#allocation4]   ;;  %s4771_s23 = smov 128  }
   0x3   :  { %s48_s22 = sshll.u32 %s4770_s21, 4  ;;  %s4772_s24 = smov 8   ;;  %s49_s22 = int_to_ptr.vmem [resolvable:$true] %s48_s22 }
   0x4   :  { %54 = dma.hbm_to_vmem [thread:$0]  %s47_s20, 6144, %s49_s22, [#allocation5], %s4771_s23, %s4771_s23, %s4772_s24  }
   0x5   :  { %s80_s27 = sshll.u32 %s5064_s10, 4  ;;  %s4773_s28 = smov [#allocation7]   ;;  %s81_s27 = int_to_ptr.hbm [resolvable:$true] %s80_s27 }
   0x6   :  { %s82_s29 = sshll.u32 %s4773_s28, 4  ;;  %s31_s17 = sshll.u32 %s5056_s2, 4  ;;  %s83_s29 = int_to_ptr.vmem [resolvable:$true] %s82_s29  ;;  %s32_s17 = int_to_ptr.hbm [resolvable:$true] %s31_s17 }
   0x7   :  { %s4774_s4 = smov 64   ;;  %s4775_s18 = smov 4  }
   0x8   :  { %88 = dma.hbm_to_vmem [thread:$0]  %s81_s27, 1024, %s83_s29, [#allocation8], %s4774_s4, %s4774_s4, %s4775_s18  }
   0x9   :  { %s4776_s19 = smov [#allocation2]   ;;  %s63_s23 = sshll.u32 %s5061_s7, 4  ;;  %s64_s23 = int_to_ptr.hbm [resolvable:$true] %s63_s23 }
   0xa   :  { %s33_s21 = sshll.u32 %s4776_s19, 4  ;;  %s4777_s10 = smov 192   ;;  %s34_s21 = int_to_ptr.vmem [resolvable:$true] %s33_s21 }
   0xb   :  { %s4778_s24 = smov 12   ;;  %s4779_s25 = smov [#allocation6]  }
   0xc   :  { %39 = dma.hbm_to_vmem [thread:$0]  %s32_s17, 30720, %s34_s21, [#allocation3], %s4777_s10, %s4777_s10, %s4778_s24  }
   0xd   :  { %s65_s26 = sshll.u32 %s4779_s25, 4  ;;  %s97_s30 = sshll.u32 %s5067_s13, 4  ;;  %s66_s26 = int_to_ptr.vmem [resolvable:$true] %s65_s26  ;;  %s98_s30 = int_to_ptr.hbm [resolvable:$true] %s97_s30 }
   0xe   :  { %71 = dma.hbm_to_vmem [thread:$0]  %s64_s23, 2048, %s66_s26, [#allocation5], %s4774_s4, %s4774_s4, %s4775_s18  }
   0xf   :  { %s4780_s27 = smov [#allocation9]  }
  0x10   :  { %s99_s29 = sshll.u32 %s4780_s27, 4  ;;  %s100_s29 = int_to_ptr.vmem [resolvable:$true] %s99_s29 }
  0x11   :  { %105 = dma.hbm_to_vmem [thread:$0]  %s98_s30, 1024, %s100_s29, [#allocation8], %s4774_s4, %s4774_s4, %s4775_s18  }
  0x12   :  { %4764 = dma.done.wait [#allocation3], 30720  }
  0x13   :  { %4765 = vsyncadd [#allocation3], 4294936576 }
  0x14   :  { %4766 = dma.done.wait [#allocation5], 8192  }
  0x15   :  { %4767 = vsyncadd [#allocation5], 4294959104 }
  0x16   :  { %4768 = dma.done.wait [#allocation8], 2048  }
  0x17   :  { %4769 = vsyncadd [#allocation8], 4294965248  ;;  %v3088_v0 = vld [vmem:[#allocation2 + $0xa8] sm:$0xf]  ;;  %v4324_v1 = vld [vmem:[#allocation2 + $0xb0] sm:$0xf0] }
  0x18   :  { %v3184_v2 = vld [vmem:[#allocation2 + $0x168] sm:$0xf]  ;;  %v3089_v3 = vor.u32 %v4324_v1, %v3088_v0  ;;  %v4348_v4 = vld [vmem:[#allocation2 + $0x170] sm:$0xf0]  ;;  %v3076_v11 = vld [vmem:[#allocation2 + $0x90] sm:$0xf] }
  0x19   :  { %v3280_v5 = vld [vmem:[#allocation2 + $0x228] sm:$0xf]  ;;  %v4372_v6 = vld [vmem:[#allocation2 + $0x230] sm:$0xf0]  ;;  %v3185_v7 = vor.u32 %v4348_v4, %v3184_v2  ;;  %v4321_v13 = vld [vmem:[#allocation2 + $0x98] sm:$0xf0] }
  0x1a   :  { %v3281_v8 = vor.u32 %v4372_v6, %v3280_v5  ;;  %v3376_v9 = vld [vmem:[#allocation2 + $0x2e8] sm:$0xf]  ;;  %v4396_v10 = vld [vmem:[#allocation2 + $0x2f0] sm:$0xf0]  ;;  %1779 = vmatpush.bf16.msra.mxu0 %v3089_v3  ;;  %v3172_v14 = vld [vmem:[#allocation2 + $0x150] sm:$0xf]  ;;  %v3077_v16 = vor.u32 %v4321_v13, %v3076_v11 }
  0x1b   :  { %v3377_v12 = vor.u32 %v4396_v10, %v3376_v9  ;;  %v4345_v15 = vld [vmem:[#allocation2 + $0x158] sm:$0xf0]  ;;  %1792 = vmatpush.bf16.msra.mxu1 %v3185_v7  ;;  %v3268_v18 = vld [vmem:[#allocation2 + $0x210] sm:$0xf]  ;;  %v3064_v23 = vld [vmem:[#allocation2 + $0x78] sm:$0xf] }
  0x1c   :  { %1805 = vmatpush.bf16.msra.mxu2 %v3281_v8  ;;  %v3173_v17 = vor.u32 %v4345_v15, %v3172_v14  ;;  %v4369_v19 = vld [vmem:[#allocation2 + $0x218] sm:$0xf0]  ;;  %v3364_v20 = vld [vmem:[#allocation2 + $0x2d0] sm:$0xf]  ;;  %v4318_v24 = vld [vmem:[#allocation2 + $0x80] sm:$0xf0] }
  0x1d   :  { %1818 = vmatpush.bf16.msra.mxu3 %v3377_v12  ;;  %v3269_v21 = vor.u32 %v4369_v19, %v3268_v18  ;;  %v4393_v22 = vld [vmem:[#allocation2 + $0x2d8] sm:$0xf0]  ;;  %v3160_v26 = vld [vmem:[#allocation2 + $0x138] sm:$0xf]  ;;  %v4342_v27 = vld [vmem:[#allocation2 + $0x140] sm:$0xf0]  ;;  %v3065_v29 = vor.u32 %v4318_v24, %v3064_v23 }
  0x1e   :  { %v3365_v25 = vor.u32 %v4393_v22, %v3364_v20  ;;  %v3256_v28 = vld [vmem:[#allocation2 + $0x1f8] sm:$0xf]  ;;  %1780 = vmatpush.bf16.msra.mxu0 %v3077_v16  ;;  %v4366_v30 = vld [vmem:[#allocation2 + $0x200] sm:$0xf0]  ;;  %v3161_v33 = vor.u32 %v4342_v27, %v3160_v26  ;;  %v3052_v35 = vld [vmem:[#allocation2 + $0x60] sm:$0xf] }
  0x1f   :  { %v3352_v31 = vld [vmem:[#allocation2 + $0x2b8] sm:$0xf]  ;;  %v4390_v32 = vld [vmem:[#allocation2 + $0x2c0] sm:$0xf0]  ;;  %1793 = vmatpush.bf16.msra.mxu1 %v3173_v17  ;;  %v3257_v34 = vor.u32 %v4366_v30, %v3256_v28  ;;  %v4315_v36 = vld [vmem:[#allocation2 + $0x68] sm:$0xf0] }
  0x20   :  { %1806 = vmatpush.bf16.msra.mxu2 %v3269_v21  ;;  %v3148_v37 = vld [vmem:[#allocation2 + $0x120] sm:$0xf]  ;;  %v3353_v38 = vor.u32 %v4390_v32, %v3352_v31  ;;  %v4339_v39 = vld [vmem:[#allocation2 + $0x128] sm:$0xf0]  ;;  %v3053_v44 = vor.u32 %v4315_v36, %v3052_v35  ;;  %v3040_v47 = vld [vmem:[#allocation2 + $0x48] sm:$0xf] }
  0x21   :  { %1819 = vmatpush.bf16.msra.mxu3 %v3365_v25  ;;  %v3244_v40 = vld [vmem:[#allocation2 + $0x1e0] sm:$0xf]  ;;  %v4363_v41 = vld [vmem:[#allocation2 + $0x1e8] sm:$0xf0]  ;;  %v3149_v45 = vor.u32 %v4339_v39, %v3148_v37  ;;  %v4312_v48 = vld [vmem:[#allocation2 + $0x50] sm:$0xf0] }
  0x22   :  { %v3340_v42 = vld [vmem:[#allocation2 + $0x2a0] sm:$0xf]  ;;  %v4387_v43 = vld [vmem:[#allocation2 + $0x2a8] sm:$0xf0]  ;;  %1781 = vmatpush.bf16.msra.mxu0 %v3065_v29  ;;  %v3245_v46 = vor.u32 %v4363_v41, %v3244_v40  ;;  %v3136_v49 = vld [vmem:[#allocation2 + $0x108] sm:$0xf]  ;;  %v3041_v56 = vor.u32 %v4312_v48, %v3040_v47 }
  0x23   :  { %1794 = vmatpush.bf16.msra.mxu1 %v3161_v33  ;;  %v3341_v50 = vor.u32 %v4387_v43, %v3340_v42  ;;  %v4336_v51 = vld [vmem:[#allocation2 + $0x110] sm:$0xf0]  ;;  %v3232_v52 = vld [vmem:[#allocation2 + $0x1c8] sm:$0xf]  ;;  %v3028_v59 = vld [vmem:[#allocation2 + $0x30] sm:$0xf] }
  0x24   :  { %1807 = vmatpush.bf16.msra.mxu2 %v3257_v34  ;;  %v4360_v53 = vld [vmem:[#allocation2 + $0x1d0] sm:$0xf0]  ;;  %v3328_v54 = vld [vmem:[#allocation2 + $0x288] sm:$0xf]  ;;  %v3137_v57 = vor.u32 %v4336_v51, %v3136_v49  ;;  %v4309_v60 = vld [vmem:[#allocation2 + $0x38] sm:$0xf0] }
  0x25   :  { %1820 = vmatpush.bf16.msra.mxu3 %v3353_v38  ;;  %v4384_v55 = vld [vmem:[#allocation2 + $0x290] sm:$0xf0]  ;;  %v3233_v58 = vor.u32 %v4360_v53, %v3232_v52  ;;  %v3124_v61 = vld [vmem:[#allocation2 + $0xf0] sm:$0xf]  ;;  %v4333_v63 = vld [vmem:[#allocation2 + $0xf8] sm:$0xf0]  ;;  %v3029_v4 = vor.u32 %v4309_v60, %v3028_v59 }
  0x26   :  { %1782 = vmatpush.bf16.msra.mxu0 %v3053_v44  ;;  %v3329_v62 = vor.u32 %v4384_v55, %v3328_v54  ;;  %v3220_v0 = vld [vmem:[#allocation2 + $0x1b0] sm:$0xf]  ;;  %v4357_v1 = vld [vmem:[#allocation2 + $0x1b8] sm:$0xf0]  ;;  %v3125_v5 = vor.u32 %v4333_v63, %v3124_v61  ;;  %v3016_v7 = vld [vmem:[#allocation2 + $0x18] sm:$0xf] }
  0x27   :  { %1795 = vmatpush.bf16.msra.mxu1 %v3149_v45  ;;  %v3316_v2 = vld [vmem:[#allocation2 + $0x270] sm:$0xf]  ;;  %v4381_v3 = vld [vmem:[#allocation2 + $0x278] sm:$0xf0]  ;;  %v3221_v6 = vor.u32 %v4357_v1, %v3220_v0  ;;  %v4306_v8 = vld [vmem:[#allocation2 + $0x20] sm:$0xf0] }
  0x28   :  { %1808 = vmatpush.bf16.msra.mxu2 %v3245_v46  ;;  %v3112_v9 = vld [vmem:[#allocation2 + $0xd8] sm:$0xf]  ;;  %v3317_v10 = vor.u32 %v4381_v3, %v3316_v2  ;;  %v4330_v11 = vld [vmem:[#allocation2 + $0xe0] sm:$0xf0]  ;;  %v3017_v16 = vor.u32 %v4306_v8, %v3016_v7  ;;  %v3004_v17 = vld [vmem:[#allocation2] sm:$0xf] }
  0x29   :  { %1821 = vmatpush.bf16.msra.mxu3 %v3341_v50  ;;  %v3208_v12 = vld [vmem:[#allocation2 + $0x198] sm:$0xf]  ;;  %v4354_v13 = vld [vmem:[#allocation2 + $0x1a0] sm:$0xf0]  ;;  %v4303_v18 = vld [vmem:[#allocation2 + $0x8] sm:$0xf0]  ;;  %v3113_v19 = vor.u32 %v4330_v11, %v3112_v9 }
  0x2a   :  { %1783 = vmatpush.bf16.msra.mxu0 %v3041_v56  ;;  %v3304_v14 = vld [vmem:[#allocation2 + $0x258] sm:$0xf]  ;;  %v4378_v15 = vld [vmem:[#allocation2 + $0x260] sm:$0xf0]  ;;  %v3209_v20 = vor.u32 %v4354_v13, %v3208_v12  ;;  %v3100_v21 = vld [vmem:[#allocation2 + $0xc0] sm:$0xf]  ;;  %v3005_v31 = vor.u32 %v4303_v18, %v3004_v17 }
  0x2b   :  { %1796 = vmatpush.bf16.msra.mxu1 %v3137_v57  ;;  %v4327_v22 = vld [vmem:[#allocation2 + $0xc8] sm:$0xf0]  ;;  %v3196_v23 = vld [vmem:[#allocation2 + $0x180] sm:$0xf]  ;;  %v3305_v24 = vor.u32 %v4378_v15, %v3304_v14  ;;  %v3472_v26 = vld [vmem:[#allocation2 + $0x3a8] sm:$0xf] }
  0x2c   :  { %1809 = vmatpush.bf16.msra.mxu2 %v3233_v58  ;;  %v4351_v25 = vld [vmem:[#allocation2 + $0x188] sm:$0xf0]  ;;  %v4420_v27 = vld [vmem:[#allocation2 + $0x3b0] sm:$0xf0]  ;;  %v3568_v28 = vld [vmem:[#allocation2 + $0x468] sm:$0xf]  ;;  %v3101_v35 = vor.u32 %v4327_v22, %v3100_v21 }
  0x2d   :  { %1822 = vmatpush.bf16.msra.mxu3 %v3329_v62  ;;  %v4444_v29 = vld [vmem:[#allocation2 + $0x470] sm:$0xf0]  ;;  %v3664_v30 = vld [vmem:[#allocation2 + $0x528] sm:$0xf]  ;;  %v3292_v33 = vld [vmem:[#allocation2 + $0x240] sm:$0xf]  ;;  %v3197_v36 = vor.u32 %v4351_v25, %v3196_v23  ;;  %v3473_v39 = vor.u32 %v4420_v27, %v3472_v26 }
  0x2e   :  { %1784 = vmatpush.bf16.msra.mxu0 %v3029_v4  ;;  %v4468_v32 = vld [vmem:[#allocation2 + $0x530] sm:$0xf0]  ;;  %v4375_v34 = vld [vmem:[#allocation2 + $0x248] sm:$0xf0]  ;;  %v3760_v37 = vld [vmem:[#allocation2 + $0x5e8] sm:$0xf]  ;;  %v3569_v40 = vor.u32 %v4444_v29, %v3568_v28 }
  0x2f   :  { %1797 = vmatpush.bf16.msra.mxu1 %v3125_v5  ;;  %v4492_v38 = vld [vmem:[#allocation2 + $0x5f0] sm:$0xf0]  ;;  %v3460_v41 = vld [vmem:[#allocation2 + $0x390] sm:$0xf]  ;;  %v3665_v42 = vor.u32 %v4468_v32, %v3664_v30  ;;  %v3293_v43 = vor.u32 %v4375_v34, %v3292_v33  ;;  %v4417_v44 = vld [vmem:[#allocation2 + $0x398] sm:$0xf0] }
  0x30   :  { %1810 = vmatpush.bf16.msra.mxu2 %v3221_v6  ;;  %v3556_v45 = vld [vmem:[#allocation2 + $0x450] sm:$0xf]  ;;  %v4441_v46 = vld [vmem:[#allocation2 + $0x458] sm:$0xf0]  ;;  %v3761_v47 = vor.u32 %v4492_v38, %v3760_v37  ;;  %v3461_v52 = vor.u32 %v4417_v44, %v3460_v41  ;;  %v3448_v54 = vld [vmem:[#allocation2 + $0x378] sm:$0xf] }
  0x31   :  { %1823 = vmatpush.bf16.msra.mxu3 %v3317_v10  ;;  %v3652_v48 = vld [vmem:[#allocation2 + $0x510] sm:$0xf]  ;;  %v4465_v49 = vld [vmem:[#allocation2 + $0x518] sm:$0xf0]  ;;  %v3557_v53 = vor.u32 %v4441_v46, %v3556_v45  ;;  %v4414_v55 = vld [vmem:[#allocation2 + $0x380] sm:$0xf0] }
  0x32   :  { %1785 = vmatpush.bf16.msra.mxu0 %v3017_v16  ;;  %v3748_v50 = vld [vmem:[#allocation2 + $0x5d0] sm:$0xf]  ;;  %v4489_v51 = vld [vmem:[#allocation2 + $0x5d8] sm:$0xf0]  ;;  %v3653_v56 = vor.u32 %v4465_v49, %v3652_v48  ;;  %v3544_v57 = vld [vmem:[#allocation2 + $0x438] sm:$0xf]  ;;  %v3449_v3 = vor.u32 %v4414_v55, %v3448_v54 }
  0x33   :  { %1798 = vmatpush.bf16.msra.mxu1 %v3113_v19  ;;  %v4438_v58 = vld [vmem:[#allocation2 + $0x440] sm:$0xf0]  ;;  %v130_v59 = vld [vmem:[%s5054_s0 + $0x8] sm:$0xff]  ;;  %v3749_v60 = vor.u32 %v4489_v51, %v3748_v50  ;;  %v3640_v61 = vld [vmem:[#allocation2 + $0x4f8] sm:$0xf]  ;;  %vm2237_vm0 = vcmask 1044480  }
  0x34   :  { %1811 = vmatpush.bf16.msra.mxu2 %v3209_v20  ;;  %v4462_v62 = vld [vmem:[#allocation2 + $0x500] sm:$0xf0]  ;;  %v471_v63 = vunpack.c.l.b16 %v130_v59  ;;  %v472_v0 = vunpack.c.h.b16 %v130_v59  ;;  %v3736_v1 = vld [vmem:[#allocation2 + $0x5b8] sm:$0xf]  ;;  %v3545_v4 = vor.u32 %v4438_v58, %v3544_v57  ;;  %v3436_v5 = vld [vmem:[#allocation2 + $0x360] sm:$0xf] }
  0x35   :  { %1824 = vmatpush.bf16.msra.mxu3 %v3305_v24  ;;  %v4486_v2 = vld [vmem:[#allocation2 + $0x5c0] sm:$0xf0]  ;;  %v3641_v8 = vor.u32 %v4462_v62, %v3640_v61  ;;  %v4411_v9 = vld [vmem:[#allocation2 + $0x368] sm:$0xf0]  ;;  %v3532_v10 = vld [vmem:[#allocation2 + $0x420] sm:$0xf] }
  0x36   :  { %1786 = vmatpush.bf16.msra.mxu0 %v3005_v31  ;;  %v4879_v6 = vpack.c.b16 %v471_v63, %v471_v63  ;;  %v129_v7 = vld [vmem:[%s5054_s0] sm:$0xff]  ;;  %v4435_v11 = vld [vmem:[#allocation2 + $0x428] sm:$0xf0]  ;;  %v4884_v13 = vpack.c.b16 %v472_v0, %v472_v0  ;;  %v3737_v15 = vor.u32 %v4486_v2, %v3736_v1  ;;  %v3437_v22 = vor.u32 %v4411_v9, %v3436_v5  ;;  %v3424_v24 = vld [vmem:[#allocation2 + $0x348] sm:$0xf] }
  0x37   :  { %1799 = vmatpush.bf16.msra.mxu1 %v3101_v35  ;;  %v469_v12 = vunpack.c.l.b16 %v129_v7  ;;  %v470_v14 = vunpack.c.h.b16 %v129_v7  ;;  %v3628_v16 = vld [vmem:[#allocation2 + $0x4e0] sm:$0xf]  ;;  %v4459_v17 = vld [vmem:[#allocation2 + $0x4e8] sm:$0xf0]  ;;  %v3533_v23 = vor.u32 %v4435_v11, %v3532_v10  ;;  %v4408_v26 = vld [vmem:[#allocation2 + $0x350] sm:$0xf0] }
  0x38   :  { %1812 = vmatpush.bf16.msra.mxu2 %v3197_v36  ;;  %v3724_v18 = vld [vmem:[#allocation2 + $0x5a0] sm:$0xf]  ;;  %v4483_v19 = vld [vmem:[#allocation2 + $0x5a8] sm:$0xf0]  ;;  %v3629_v25 = vor.u32 %v4459_v17, %v3628_v16  ;;  %v3520_v27 = vld [vmem:[#allocation2 + $0x408] sm:$0xf]  ;;  %v3425_v34 = vor.u32 %v4408_v26, %v3424_v24 }
  0x39   :  { %1825 = vmatpush.bf16.msra.mxu3 %v3293_v43  ;;  %v4887_v20 = vpack.c.b16 %v469_v12, %v469_v12  ;;  %v4890_v21 = vpack.c.b16 %v470_v14, %v470_v14  ;;  %v4432_v28 = vld [vmem:[#allocation2 + $0x410] sm:$0xf0]  ;;  %v3725_v29 = vor.u32 %v4483_v19, %v3724_v18  ;;  %v3616_v30 = vld [vmem:[#allocation2 + $0x4c8] sm:$0xf]  ;;  %v3412_v36 = vld [vmem:[#allocation2 + $0x330] sm:$0xf] }
  0x3a   :  { %1831 = vmatpush.bf16.msrb.mxu0 %v3473_v39  ;;  %v4456_v31 = vld [vmem:[#allocation2 + $0x4d0] sm:$0xf0]  ;;  %v3712_v32 = vld [vmem:[#allocation2 + $0x588] sm:$0xf]  ;;  %v3521_v35 = vor.u32 %v4432_v28, %v3520_v27  ;;  %v4405_v38 = vld [vmem:[#allocation2 + $0x338] sm:$0xf0] }
  0x3b   :  { %1844 = vmatpush.bf16.msrb.mxu1 %v3569_v40  ;;  %1813 = vmatmul.bf16.vlgmr.msra.gmra.mxu2 %v4879_v6  ;;  %v4480_v33 = vld [vmem:[#allocation2 + $0x590] sm:$0xf0]  ;;  %v3617_v37 = vor.u32 %v4456_v31, %v3616_v30  ;;  %v3508_v39 = vld [vmem:[#allocation2 + $0x3f0] sm:$0xf]  ;;  %v4429_v40 = vld [vmem:[#allocation2 + $0x3f8] sm:$0xf0]  ;;  %v3413_v46 = vor.u32 %v4405_v38, %v3412_v36 }
  0x3c   :  { %1857 = vmatpush.bf16.msrb.mxu2 %v3665_v42  ;;  %1826 = vmatmul.bf16.vlgmr.msra.gmra.mxu3 %v4884_v13  ;;  %v3713_v41 = vor.u32 %v4480_v33, %v3712_v32  ;;  %v3604_v42 = vld [vmem:[#allocation2 + $0x4b0] sm:$0xf]  ;;  %v4453_v43 = vld [vmem:[#allocation2 + $0x4b8] sm:$0xf0]  ;;  %v3400_v48 = vld [vmem:[#allocation2 + $0x318] sm:$0xf] }
  0x3d   :  { %1870 = vmatpush.bf16.msrb.mxu3 %v3761_v47  ;;  %1787 = vmatmul.bf16.vlgmr.msra.gmra.mxu0 %v4887_v20  ;;  %v3700_v44 = vld [vmem:[#allocation2 + $0x570] sm:$0xf]  ;;  %v4477_v45 = vld [vmem:[#allocation2 + $0x578] sm:$0xf0]  ;;  %v3509_v47 = vor.u32 %v4429_v40, %v3508_v39  ;;  %v3605_v49 = vor.u32 %v4453_v43, %v3604_v42  ;;  %v4402_v50 = vld [vmem:[#allocation2 + $0x320] sm:$0xf0] }
  0x3e   :  { %1832 = vmatpush.bf16.msrb.mxu0 %v3461_v52  ;;  %1800 = vmatmul.bf16.vlgmr.msra.gmra.mxu1 %v4890_v21  ;;  %v3496_v51 = vld [vmem:[#allocation2 + $0x3d8] sm:$0xf]  ;;  %v4426_v52 = vld [vmem:[#allocation2 + $0x3e0] sm:$0xf0]  ;;  %v3388_v58 = vld [vmem:[#allocation2 + $0x300] sm:$0xf] }
  0x3f   :  { %1845 = vmatpush.bf16.msrb.mxu1 %v3557_v53  ;;  %v3701_v53 = vor.u32 %v4477_v45, %v3700_v44  ;;  %v3592_v54 = vld [vmem:[#allocation2 + $0x498] sm:$0xf]  ;;  %v4450_v55 = vld [vmem:[#allocation2 + $0x4a0] sm:$0xf0]  ;;  %v4399_v59 = vld [vmem:[#allocation2 + $0x308] sm:$0xf0]  ;;  %v3497_v61 = vor.u32 %v4426_v52, %v3496_v51 }
  0x40   :  { %1858 = vmatpush.bf16.msrb.mxu2 %v3653_v56  ;;  %v3688_v56 = vld [vmem:[#allocation2 + $0x558] sm:$0xf]  ;;  %v4474_v57 = vld [vmem:[#allocation2 + $0x560] sm:$0xf0]  ;;  %v3484_v62 = vld [vmem:[#allocation2 + $0x3c0] sm:$0xf]  ;;  %v3593_v1 = vor.u32 %v4450_v55, %v3592_v54 }
  0x41   :  { %1871 = vmatpush.bf16.msrb.mxu3 %v3749_v60  ;;  %v3401_v60 = vor.u32 %v4402_v50, %v3400_v48  ;;  %v4423_v63 = vld [vmem:[#allocation2 + $0x3c8] sm:$0xf0]  ;;  %v131_v0 = vld [vmem:[%s5054_s0 + $0x10] sm:$0xff]  ;;  %v3580_v2 = vld [vmem:[#allocation2 + $0x480] sm:$0xf]  ;;  %v3689_v5 = vor.u32 %v4474_v57, %v3688_v56  ;;  %vm2233_vm1 = vcmask 80896  }
  0x42   :  { %1833 = vmatpush.bf16.msrb.mxu0 %v3449_v3  ;;  %v4447_v3 = vld [vmem:[#allocation2 + $0x488] sm:$0xf0]  ;;  %v3856_v7 = vld [vmem:[#allocation2 + $0x6a8] sm:$0xf]  ;;  %v4540_v10 = vld [vmem:[#allocation2 + $0x770] sm:$0xf0]  ;;  %v473_v14 = vunpack.c.l.b16 %v131_v0  ;;  %v3485_v16 = vor.u32 %v4423_v63, %v3484_v62  ;;  %v474_v26 = vunpack.c.h.b16 %v131_v0 }
  0x43   :  { %1846 = vmatpush.bf16.msrb.mxu1 %v3545_v4  ;;  %v132_v4 = vld [vmem:[%s5054_s0 + $0x18] sm:$0xff]  ;;  %v3952_v9 = vld [vmem:[#allocation2 + $0x768] sm:$0xf]  ;;  %v4323_v11 = vld [vmem:[#allocation2 + $0xac] sm:$0xf] }
  0x44   :  { %1859 = vmatpush.bf16.msrb.mxu2 %v3641_v8  ;;  %v4516_v8 = vld [vmem:[#allocation2 + $0x6b0] sm:$0xf0]  ;;  %v3090_v12 = vld [vmem:[#allocation2 + $0xb4] sm:$0xf0]  ;;  %v3676_v17 = vld [vmem:[#allocation2 + $0x540] sm:$0xf]  ;;  %v475_v19 = vunpack.c.l.b16 %v132_v4  ;;  %v3953_v27 = vor.u32 %v4540_v10, %v3952_v9  ;;  %v4900_v36 = vpack.c.b16 %v473_v14, %v473_v14  ;;  %v4904_v43 = vpack.c.b16 %v474_v26, %v474_v26 }
  0x45   :  { %1872 = vmatpush.bf16.msrb.mxu3 %v3737_v15  ;;  %v3389_v15 = vor.u32 %v4399_v59, %v3388_v58  ;;  %v4471_v18 = vld [vmem:[#allocation2 + $0x548] sm:$0xf0]  ;;  %v3093_v28 = vor.u32 %v4323_v11, %v3090_v12  ;;  %v4513_v30 = vld [vmem:[#allocation2 + $0x698] sm:$0xf0]  ;;  %v3940_v31 = vld [vmem:[#allocation2 + $0x750] sm:$0xf] }
  0x46   :  { %1834 = vmatpush.bf16.msrb.mxu0 %v3437_v22  ;;  %v3581_v22 = vor.u32 %v4447_v3, %v3580_v2  ;;  %v4347_v24 = vld [vmem:[#allocation2 + $0x16c] sm:$0xf]  ;;  %v3677_v32 = vor.u32 %v4471_v18, %v3676_v17  ;;  %v4537_v33 = vld [vmem:[#allocation2 + $0x758] sm:$0xf0]  ;;  %v4902_v39 = vpack.c.b16 %v475_v19, %v475_v19  ;;  %v3174_v42 = vld [vmem:[#allocation2 + $0x15c] sm:$0xf0] }
  0x47   :  { %1847 = vmatpush.bf16.msrb.mxu1 %v3533_v23  ;;  %v3857_v23 = vor.u32 %v4516_v8, %v3856_v7  ;;  %v3941_v44 = vor.u32 %v4537_v33, %v3940_v31  ;;  %v3928_v48 = vld [vmem:[#allocation2 + $0x738] sm:$0xf]  ;;  %v4534_v50 = vld [vmem:[#allocation2 + $0x740] sm:$0xf0]  ;;  %v4317_v51 = vld [vmem:[#allocation2 + $0x7c] sm:$0xf] }
  0x48   :  { %1860 = vmatpush.bf16.msrb.mxu2 %v3629_v25  ;;  %v3186_v25 = vld [vmem:[#allocation2 + $0x174] sm:$0xf0]  ;;  %v3066_v52 = vld [vmem:[#allocation2 + $0x84] sm:$0xf0]  ;;  %v4341_v55 = vld [vmem:[#allocation2 + $0x13c] sm:$0xf]  ;;  %v3929_v57 = vor.u32 %v4534_v50, %v3928_v48 }
  0x49   :  { %1873 = vmatpush.bf16.msrb.mxu3 %v3725_v29  ;;  %v3844_v29 = vld [vmem:[#allocation2 + $0x690] sm:$0xf]  ;;  %v3189_v38 = vor.u32 %v4347_v24, %v3186_v25  ;;  %v3162_v56 = vld [vmem:[#allocation2 + $0x144] sm:$0xf0]  ;;  %v3069_v58 = vor.u32 %v4317_v51, %v3066_v52  ;;  %v3820_v59 = vld [vmem:[#allocation2 + $0x660] sm:$0xf] }
  0x4a   :  { %1835 = vmatpush.bf16.msrb.mxu0 %v3425_v34  ;;  %v4320_v34 = vld [vmem:[#allocation2 + $0x94] sm:$0xf]  ;;  %v3845_v40 = vor.u32 %v4513_v30, %v3844_v29  ;;  %v4531_v62 = vld [vmem:[#allocation2 + $0x728] sm:$0xf0]  ;;  %v4314_v63 = vld [vmem:[#allocation2 + $0x64] sm:$0xf] }
  0x4b   :  { %1848 = vmatpush.bf16.msrb.mxu1 %v3521_v35  ;;  %v3078_v35 = vld [vmem:[#allocation2 + $0x9c] sm:$0xf0]  ;;  %v3054_v0 = vld [vmem:[#allocation2 + $0x6c] sm:$0xf0]  ;;  %v4338_v3 = vld [vmem:[#allocation2 + $0x124] sm:$0xf] }
  0x4c   :  { %1861 = vmatpush.bf16.msrb.mxu2 %v3617_v37  ;;  %v476_v37 = vunpack.c.h.b16 %v132_v4  ;;  %v3081_v45 = vor.u32 %v4320_v34, %v3078_v35  ;;  %v3150_v4 = vld [vmem:[#allocation2 + $0x12c] sm:$0xf0]  ;;  %v3057_v7 = vor.u32 %v4314_v63, %v3054_v0  ;;  %v3808_v8 = vld [vmem:[#allocation2 + $0x648] sm:$0xf]  ;;  %v4504_v9 = vld [vmem:[#allocation2 + $0x650] sm:$0xf0] }
  0x4d   :  { %1874 = vmatpush.bf16.msrb.mxu3 %v3713_v41  ;;  %v4344_v41 = vld [vmem:[#allocation2 + $0x154] sm:$0xf]  ;;  %v3904_v10 = vld [vmem:[#allocation2 + $0x708] sm:$0xf]  ;;  %v4311_v12 = vld [vmem:[#allocation2 + $0x4c] sm:$0xf] }
  0x4e   :  { %1836 = vmatpush.bf16.msrb.mxu0 %v3413_v46  ;;  %v3832_v46 = vld [vmem:[#allocation2 + $0x678] sm:$0xf]  ;;  %v4528_v11 = vld [vmem:[#allocation2 + $0x710] sm:$0xf0]  ;;  %v4335_v17 = vld [vmem:[#allocation2 + $0x10c] sm:$0xf] }
  0x4f   :  { %1849 = vmatpush.bf16.msrb.mxu1 %v3509_v47  ;;  %v4510_v47 = vld [vmem:[#allocation2 + $0x680] sm:$0xf0]  ;;  %v3042_v14 = vld [vmem:[#allocation2 + $0x54] sm:$0xf0]  ;;  %v3905_v19 = vor.u32 %v4528_v11, %v3904_v10  ;;  %v4501_v24 = vld [vmem:[#allocation2 + $0x638] sm:$0xf0] }
  0x50   :  { %1862 = vmatpush.bf16.msrb.mxu2 %v3605_v49  ;;  %v4907_v49 = vpack.c.b16 %v476_v37, %v476_v37  ;;  %v3833_v54 = vor.u32 %v4510_v47, %v3832_v46  ;;  %v3138_v18 = vld [vmem:[#allocation2 + $0x114] sm:$0xf0]  ;;  %v3892_v25 = vld [vmem:[#allocation2 + $0x6f0] sm:$0xf]  ;;  %v4525_v26 = vld [vmem:[#allocation2 + $0x6f8] sm:$0xf0] }
  0x51   :  { %1875 = vmatpush.bf16.msrb.mxu3 %v3701_v53  ;;  %v3177_v53 = vor.u32 %v4344_v41, %v3174_v42  ;;  %v3141_v29 = vor.u32 %v4335_v17, %v3138_v18  ;;  %v4332_v30 = vld [vmem:[#allocation2 + $0xf4] sm:$0xf]  ;;  %v3784_v33 = vld [vmem:[#allocation2 + $0x618] sm:$0xf]  ;;  %v4498_v34 = vld [vmem:[#allocation2 + $0x620] sm:$0xf0]  ;;  %v3893_v35 = vor.u32 %v4525_v26, %v3892_v25 }
  0x52   :  { %1837 = vmatpush.bf16.msrb.mxu0 %v3401_v60  ;;  %v4507_v60 = vld [vmem:[#allocation2 + $0x668] sm:$0xf0]  ;;  %v4305_v41 = vld [vmem:[#allocation2 + $0x1c] sm:$0xf]  ;;  %v3018_v42 = vld [vmem:[#allocation2 + $0x24] sm:$0xf0]  ;;  %v3785_v50 = vor.u32 %v4498_v34, %v3784_v33 }
  0x53   :  { %1850 = vmatpush.bf16.msrb.mxu1 %v3497_v61  ;;  %v3916_v61 = vld [vmem:[#allocation2 + $0x720] sm:$0xf]  ;;  %v3821_v2 = vor.u32 %v4507_v60, %v3820_v59  ;;  %v4495_v48 = vld [vmem:[#allocation2 + $0x608] sm:$0xf0]  ;;  %v3282_v59 = vld [vmem:[#allocation2 + $0x234] sm:$0xf0] }
  0x54   :  { %1863 = vmatpush.bf16.msrb.mxu2 %v3593_v1  ;;  %v3165_v1 = vor.u32 %v4341_v55, %v3162_v56  ;;  %v3772_v47 = vld [vmem:[#allocation2 + $0x600] sm:$0xf]  ;;  %v4519_v52 = vld [vmem:[#allocation2 + $0x6c8] sm:$0xf0]  ;;  %v3021_v55 = vor.u32 %v4305_v41, %v3018_v42  ;;  %v3006_v56 = vld [vmem:[#allocation2 + $0xc] sm:$0xf0] }
  0x55   :  { %1876 = vmatpush.bf16.msrb.mxu3 %v3689_v5  ;;  %v3917_v5 = vor.u32 %v4531_v62, %v3916_v61  ;;  %v3868_v51 = vld [vmem:[#allocation2 + $0x6c0] sm:$0xf]  ;;  %v4395_v60 = vld [vmem:[#allocation2 + $0x2ec] sm:$0xf]  ;;  %v3378_v62 = vld [vmem:[#allocation2 + $0x2f4] sm:$0xf0]  ;;  %v3773_v0 = vor.u32 %v4495_v48, %v3772_v47 }
  0x56   :  { %1838 = vmatpush.bf16.msrb.mxu0 %v3389_v15  ;;  %v3153_v15 = vor.u32 %v4338_v3, %v3150_v4  ;;  %v4419_v63 = vld [vmem:[#allocation2 + $0x3ac] sm:$0xf]  ;;  %v3102_v3 = vld [vmem:[#allocation2 + $0xcc] sm:$0xf0]  ;;  %v3270_v17 = vld [vmem:[#allocation2 + $0x21c] sm:$0xf0] }
  0x57   :  { %1851 = vmatpush.bf16.msrb.mxu1 %v3485_v16  ;;  %v3809_v16 = vor.u32 %v4504_v9, %v3808_v8  ;;  %v4443_v8 = vld [vmem:[#allocation2 + $0x46c] sm:$0xf]  ;;  %v3570_v9 = vld [vmem:[#allocation2 + $0x474] sm:$0xf0]  ;;  %v4392_v18 = vld [vmem:[#allocation2 + $0x2d4] sm:$0xf] }
  0x58   :  { %1864 = vmatpush.bf16.msrb.mxu2 %v3581_v22  ;;  %v3045_v22 = vor.u32 %v4311_v12, %v3042_v14  ;;  %v3381_v12 = vor.u32 %v4395_v60, %v3378_v62  ;;  %v4368_v14 = vld [vmem:[#allocation2 + $0x214] sm:$0xf]  ;;  %v3462_v25 = vld [vmem:[#allocation2 + $0x39c] sm:$0xf0]  ;;  %v3258_v33 = vld [vmem:[#allocation2 + $0x204] sm:$0xf0] }
  0x59   :  { %1877 = vmatpush.bf16.msrb.mxu3 %v3677_v32  ;;  %1839 = vmatmul.bf16.vlgmr.msrb.gmra.mxu0 %v4900_v36  ;;  %v3126_v32 = vld [vmem:[#allocation2 + $0xfc] sm:$0xf0]  ;;  %v4389_v34 = vld [vmem:[#allocation2 + $0x2bc] sm:$0xf]  ;;  %v3546_v42 = vld [vmem:[#allocation2 + $0x444] sm:$0xf0] }
  0x5a   :  { %1883 = vmatpush.bf16.msra.mxu0 %v3857_v23  ;;  %1852 = vmatmul.bf16.vlgmr.msrb.gmra.mxu1 %v4904_v43  ;;  %v3796_v23 = vld [vmem:[#allocation2 + $0x630] sm:$0xf]  ;;  %v3129_v46 = vor.u32 %v4332_v30, %v3126_v32  ;;  %v4437_v41 = vld [vmem:[#allocation2 + $0x43c] sm:$0xf]  ;;  %v4383_v62 = vld [vmem:[#allocation2 + $0x28c] sm:$0xf] }
  0x5b   :  { %1896 = vmatpush.bf16.msra.mxu1 %v3953_v27  ;;  %1865 = vmatmul.bf16.vlgmr.msrb.gmra.mxu2 %v4902_v39  ;;  %v4308_v27 = vld [vmem:[#allocation2 + $0x34] sm:$0xf]  ;;  %v3797_v31 = vor.u32 %v4501_v24, %v3796_v23  ;;  %v3573_v23 = vor.u32 %v4443_v8, %v3570_v9  ;;  %v3246_v48 = vld [vmem:[#allocation2 + $0x1ec] sm:$0xf0] }
  0x5c   :  { %1909 = vmatpush.bf16.msra.mxu2 %v3093_v28  ;;  %1878 = vmatmul.bf16.vlgmr.msrb.gmra.mxu3 %v4907_v49  ;;  %v3030_v28 = vld [vmem:[#allocation2 + $0x3c] sm:$0xf0]  ;;  %v4416_v24 = vld [vmem:[#allocation2 + $0x394] sm:$0xf] }
  0x5d   :  { %1922 = vmatpush.bf16.msra.mxu3 %v3189_v38  ;;  %v3033_v37 = vor.u32 %v4308_v27, %v3030_v28  ;;  %v3880_v38 = vld [vmem:[#allocation2 + $0x6d8] sm:$0xf]  ;;  %v4440_v27 = vld [vmem:[#allocation2 + $0x454] sm:$0xf]  ;;  %v3558_v28 = vld [vmem:[#allocation2 + $0x45c] sm:$0xf0]  ;;  %v3465_v32 = vor.u32 %v4416_v24, %v3462_v25 }
  0x5e   :  { %1884 = vmatpush.bf16.msra.mxu0 %v3845_v40  ;;  %v4522_v40 = vld [vmem:[#allocation2 + $0x6e0] sm:$0xf0]  ;;  %v4356_v8 = vld [vmem:[#allocation2 + $0x1b4] sm:$0xf]  ;;  %v4353_v24 = vld [vmem:[#allocation2 + $0x19c] sm:$0xf] }
  0x5f   :  { %1897 = vmatpush.bf16.msra.mxu1 %v3941_v44  ;;  %v4329_v44 = vld [vmem:[#allocation2 + $0xdc] sm:$0xf] }
  0x60   :  { %1910 = vmatpush.bf16.msra.mxu2 %v3081_v45  ;;  %v3114_v45 = vld [vmem:[#allocation2 + $0xe4] sm:$0xf0] }
  0x61   :  { %1923 = vmatpush.bf16.msra.mxu3 %v3177_v53  ;;  %v4302_v53 = vld [vmem:[#allocation2 + $0x4] sm:$0xf]  ;;  %v3117_v61 = vor.u32 %v4329_v44, %v3114_v45 }
  0x62   :  { %1885 = vmatpush.bf16.msra.mxu0 %v3833_v54  ;;  %v3881_v54 = vor.u32 %v4522_v40, %v3880_v38  ;;  %v4413_v38 = vld [vmem:[#allocation2 + $0x37c] sm:$0xf]  ;;  %v3450_v40 = vld [vmem:[#allocation2 + $0x384] sm:$0xf0] }
  0x63   :  { %1898 = vmatpush.bf16.msra.mxu1 %v3929_v57  ;;  %v4371_v57 = vld [vmem:[#allocation2 + $0x22c] sm:$0xf]  ;;  %v3453_v47 = vor.u32 %v4413_v38, %v3450_v40  ;;  %v4350_v38 = vld [vmem:[#allocation2 + $0x184] sm:$0xf]  ;;  %v3198_v40 = vld [vmem:[#allocation2 + $0x18c] sm:$0xf0] }
  0x64   :  { %1911 = vmatpush.bf16.msra.mxu2 %v3069_v58  ;;  %v133_v58 = vld [vmem:[%s5054_s0 + $0x20] sm:$0xff]  ;;  %v3285_v11 = vor.u32 %v4371_v57, %v3282_v59  ;;  %v4359_v59 = vld [vmem:[#allocation2 + $0x1cc] sm:$0xf] }
  0x65   :  { %1924 = vmatpush.bf16.msra.mxu3 %v3165_v1  ;;  %v3474_v1 = vld [vmem:[#allocation2 + $0x3b4] sm:$0xf0]  ;;  %v477_v4 = vunpack.c.l.b16 %v133_v58  ;;  %v478_v10 = vunpack.c.h.b16 %v133_v58 }
  0x66   :  { %1886 = vmatpush.bf16.msra.mxu0 %v3821_v2  ;;  %v4326_v2 = vld [vmem:[#allocation2 + $0xc4] sm:$0xf] }
  0x67   :  { %1899 = vmatpush.bf16.msra.mxu1 %v3917_v5  ;;  %v3869_v5 = vor.u32 %v4519_v52, %v3868_v51  ;;  %v4917_v26 = vpack.c.b16 %v478_v10, %v478_v10  ;;  %v3342_v51 = vld [vmem:[#allocation2 + $0x2ac] sm:$0xf0]  ;;  %v3549_v52 = vor.u32 %v4437_v41, %v3546_v42  ;;  %v3222_v10 = vld [vmem:[#allocation2 + $0x1bc] sm:$0xf0]  ;;  %v4374_v41 = vld [vmem:[#allocation2 + $0x244] sm:$0xf] }
  0x68   :  { %1912 = vmatpush.bf16.msra.mxu2 %v3057_v7  ;;  %v3009_v7 = vor.u32 %v4302_v53, %v3006_v56  ;;  %v4410_v53 = vld [vmem:[#allocation2 + $0x364] sm:$0xf]  ;;  %v3534_v56 = vld [vmem:[#allocation2 + $0x42c] sm:$0xf0] }
  0x69   :  { %1925 = vmatpush.bf16.msra.mxu3 %v3153_v15  ;;  %v3477_v15 = vor.u32 %v4419_v63, %v3474_v1  ;;  %v3330_v63 = vld [vmem:[#allocation2 + $0x294] sm:$0xf0]  ;;  %v4407_v1 = vld [vmem:[#allocation2 + $0x34c] sm:$0xf] }
  0x6a   :  { %1887 = vmatpush.bf16.msra.mxu0 %v3809_v16  ;;  %v3105_v16 = vor.u32 %v4326_v2, %v3102_v3  ;;  %v3426_v2 = vld [vmem:[#allocation2 + $0x354] sm:$0xf0]  ;;  %v4431_v3 = vld [vmem:[#allocation2 + $0x40c] sm:$0xf] }
  0x6b   :  { %1900 = vmatpush.bf16.msra.mxu1 %v3905_v19  ;;  %v3366_v19 = vld [vmem:[#allocation2 + $0x2dc] sm:$0xf0]  ;;  %v3429_v9 = vor.u32 %v4407_v1, %v3426_v2  ;;  %v4464_v1 = vld [vmem:[#allocation2 + $0x514] sm:$0xf] }
  0x6c   :  { %1913 = vmatpush.bf16.msra.mxu2 %v3045_v22  ;;  %v4915_v22 = vpack.c.b16 %v477_v4, %v477_v4  ;;  %v3369_v30 = vor.u32 %v4392_v18, %v3366_v19  ;;  %v3522_v4 = vld [vmem:[#allocation2 + $0x414] sm:$0xf0]  ;;  %v3510_v18 = vld [vmem:[#allocation2 + $0x3fc] sm:$0xf0]  ;;  %v3225_v19 = vor.u32 %v4356_v8, %v3222_v10 }
  0x6d   :  { %1926 = vmatpush.bf16.msra.mxu3 %v3141_v29  ;;  %v3273_v29 = vor.u32 %v4368_v14, %v3270_v17  ;;  %v3525_v14 = vor.u32 %v4431_v3, %v3522_v4  ;;  %v4428_v17 = vld [vmem:[#allocation2 + $0x3f4] sm:$0xf]  ;;  %v3654_v2 = vld [vmem:[#allocation2 + $0x51c] sm:$0xf0] }
  0x6e   :  { %1888 = vmatpush.bf16.msra.mxu0 %v3797_v31  ;;  %v4365_v31 = vld [vmem:[#allocation2 + $0x1fc] sm:$0xf]  ;;  %v4488_v3 = vld [vmem:[#allocation2 + $0x5d4] sm:$0xf]  ;;  %v3846_v8 = vld [vmem:[#allocation2 + $0x69c] sm:$0xf0]  ;;  %v3657_v10 = vor.u32 %v4464_v1, %v3654_v2 }
  0x6f   :  { %1901 = vmatpush.bf16.msra.mxu1 %v3893_v35  ;;  %v3354_v35 = vld [vmem:[#allocation2 + $0x2c4] sm:$0xf0]  ;;  %v3261_v44 = vor.u32 %v4365_v31, %v3258_v33  ;;  %v4401_v31 = vld [vmem:[#allocation2 + $0x31c] sm:$0xf]  ;;  %v3798_v1 = vld [vmem:[#allocation2 + $0x63c] sm:$0xf0] }
  0x70   :  { %1914 = vmatpush.bf16.msra.mxu2 %v3033_v37  ;;  %v3561_v37 = vor.u32 %v4440_v27, %v3558_v28  ;;  %v3357_v45 = vor.u32 %v4389_v34, %v3354_v35  ;;  %v3210_v27 = vld [vmem:[#allocation2 + $0x1a4] sm:$0xf0]  ;;  %v4377_v28 = vld [vmem:[#allocation2 + $0x25c] sm:$0xf] }
  0x71   :  { %1927 = vmatpush.bf16.msra.mxu3 %v3129_v46  ;;  %v4362_v46 = vld [vmem:[#allocation2 + $0x1e4] sm:$0xf]  ;;  %v4425_v33 = vld [vmem:[#allocation2 + $0x3dc] sm:$0xf]  ;;  %v3498_v34 = vld [vmem:[#allocation2 + $0x3e4] sm:$0xf0]  ;;  %v3213_v35 = vor.u32 %v4353_v24, %v3210_v27 }
  0x72   :  { %1889 = vmatpush.bf16.msra.mxu0 %v3785_v50  ;;  %v4386_v50 = vld [vmem:[#allocation2 + $0x2a4] sm:$0xf]  ;;  %v3249_v57 = vor.u32 %v4362_v46, %v3246_v48  ;;  %v3390_v46 = vld [vmem:[#allocation2 + $0x30c] sm:$0xf0]  ;;  %v4467_v48 = vld [vmem:[#allocation2 + $0x52c] sm:$0xf] }
  0x73   :  { %1902 = vmatpush.bf16.msra.mxu1 %v3881_v54  ;;  %v3438_v54 = vld [vmem:[#allocation2 + $0x36c] sm:$0xf0]  ;;  %v3345_v58 = vor.u32 %v4386_v50, %v3342_v51  ;;  %v3666_v50 = vld [vmem:[#allocation2 + $0x534] sm:$0xf0]  ;;  %v4491_v51 = vld [vmem:[#allocation2 + $0x5ec] sm:$0xf] }
  0x74   :  { %1915 = vmatpush.bf16.msra.mxu2 %v3021_v55  ;;  %v4434_v55 = vld [vmem:[#allocation2 + $0x424] sm:$0xf]  ;;  %v3441_v60 = vor.u32 %v4410_v53, %v3438_v54  ;;  %v4515_v53 = vld [vmem:[#allocation2 + $0x6ac] sm:$0xf]  ;;  %v3858_v54 = vld [vmem:[#allocation2 + $0x6b4] sm:$0xf0] }
  0x75   :  { %1928 = vmatpush.bf16.msra.mxu3 %v3117_v61  ;;  %v3234_v61 = vld [vmem:[#allocation2 + $0x1d4] sm:$0xf0]  ;;  %v3834_v24 = vld [vmem:[#allocation2 + $0x684] sm:$0xf0] }
  0x76   :  { %1890 = vmatpush.bf16.msra.mxu0 %v3773_v0  ;;  %v3537_v0 = vor.u32 %v4434_v55, %v3534_v56  ;;  %v3201_v55 = vor.u32 %v4350_v38, %v3198_v40  ;;  %v3822_v38 = vld [vmem:[#allocation2 + $0x66c] sm:$0xf0] }
  0x77   :  { %1903 = vmatpush.bf16.msra.mxu1 %v3869_v5  ;;  %v3237_v5 = vor.u32 %v4359_v59, %v3234_v61  ;;  %v4539_v61 = vld [vmem:[#allocation2 + $0x76c] sm:$0xf] }
  0x78   :  { %1916 = vmatpush.bf16.msra.mxu2 %v3009_v7  ;;  %v3333_v7 = vor.u32 %v4383_v62, %v3330_v63  ;;  %v3954_v62 = vld [vmem:[#allocation2 + $0x774] sm:$0xf0] }
  0x79   :  { %1929 = vmatpush.bf16.msra.mxu3 %v3105_v16  ;;  %1891 = vmatmul.bf16.vlgmr.msra.gmra.mxu0 %v4915_v22  ;;  %v3414_v16 = vld [vmem:[#allocation2 + $0x33c] sm:$0xf0] }
  0x7a   :  { %1935 = vmatpush.bf16.msrb.mxu0 %v3285_v11  ;;  %1904 = vmatmul.bf16.vlgmr.msra.gmra.mxu1 %v4917_v26  ;;  %v4380_v11 = vld [vmem:[#allocation2 + $0x274] sm:$0xf] }
  0x7b   :  { %1948 = vmatpush.bf16.msrb.mxu1 %v3381_v12  ;;  %1917 = vmatmul.bf16.vlgmr.msra.gmra.mxu2 %v4887_v20  ;;  %v3318_v12 = vld [vmem:[#allocation2 + $0x27c] sm:$0xf0] }
  0x7c   :  { %1961 = vmatpush.bf16.msrb.mxu2 %v3477_v15  ;;  %1930 = vmatmul.bf16.vlgmr.msra.gmra.mxu3 %v4890_v21  ;;  %v4404_v15 = vld [vmem:[#allocation2 + $0x334] sm:$0xf] }
  0x7d   :  { %1974 = vmatpush.bf16.msrb.mxu3 %v3573_v23  ;;  %v3321_v23 = vor.u32 %v4380_v11, %v3318_v12  ;;  %v3417_v25 = vor.u32 %v4404_v15, %v3414_v16  ;;  %v4536_v11 = vld [vmem:[#allocation2 + $0x754] sm:$0xf]  ;;  %v3942_v12 = vld [vmem:[#allocation2 + $0x75c] sm:$0xf0]  ;;  %v4461_v16 = vld [vmem:[#allocation2 + $0x4fc] sm:$0xf] }
  0x7e   :  { %1936 = vmatpush.bf16.msrb.mxu0 %v3273_v29  ;;  %v3306_v29 = vld [vmem:[#allocation2 + $0x264] sm:$0xf0] }
  0x7f   :  { %1949 = vmatpush.bf16.msrb.mxu1 %v3369_v30  ;;  %v3513_v30 = vor.u32 %v4428_v17, %v3510_v18  ;;  %v3642_v17 = vld [vmem:[#allocation2 + $0x504] sm:$0xf0]  ;;  %v4485_v18 = vld [vmem:[#allocation2 + $0x5bc] sm:$0xf] }
  0x80   :  { %1962 = vmatpush.bf16.msrb.mxu2 %v3465_v32  ;;  %v3402_v32 = vld [vmem:[#allocation2 + $0x324] sm:$0xf0]  ;;  %v3645_v27 = vor.u32 %v4461_v16, %v3642_v17  ;;  %v4521_v17 = vld [vmem:[#allocation2 + $0x6dc] sm:$0xf] }
  0x81   :  { %1975 = vmatpush.bf16.msrb.mxu3 %v3561_v37  ;;  %v3309_v37 = vor.u32 %v4377_v28, %v3306_v29  ;;  %v3405_v42 = vor.u32 %v4401_v31, %v3402_v32  ;;  %v4533_v28 = vld [vmem:[#allocation2 + $0x73c] sm:$0xf]  ;;  %v3930_v29 = vld [vmem:[#allocation2 + $0x744] sm:$0xf0]  ;;  %v4458_v32 = vld [vmem:[#allocation2 + $0x4e4] sm:$0xf] }
  0x82   :  { %1937 = vmatpush.bf16.msrb.mxu0 %v3261_v44  ;;  %v3294_v44 = vld [vmem:[#allocation2 + $0x24c] sm:$0xf0]  ;;  %v3933_v40 = vor.u32 %v4533_v28, %v3930_v29  ;;  %v4470_v28 = vld [vmem:[#allocation2 + $0x544] sm:$0xf] }
  0x83   :  { %1950 = vmatpush.bf16.msrb.mxu1 %v3357_v45  ;;  %v4398_v45 = vld [vmem:[#allocation2 + $0x304] sm:$0xf]  ;;  %v3297_v56 = vor.u32 %v4374_v41, %v3294_v44  ;;  %v3918_v44 = vld [vmem:[#allocation2 + $0x72c] sm:$0xf0] }
  0x84   :  { %1963 = vmatpush.bf16.msrb.mxu2 %v3453_v47  ;;  %v3501_v47 = vor.u32 %v4425_v33, %v3498_v34  ;;  %v3393_v59 = vor.u32 %v4398_v45, %v3390_v46  ;;  %v3630_v33 = vld [vmem:[#allocation2 + $0x4ec] sm:$0xf0]  ;;  %v4482_v34 = vld [vmem:[#allocation2 + $0x5a4] sm:$0xf] }
  0x85   :  { %1976 = vmatpush.bf16.msrb.mxu3 %v3549_v52  ;;  %v3762_v52 = vld [vmem:[#allocation2 + $0x5f4] sm:$0xf0]  ;;  %v3633_v41 = vor.u32 %v4458_v32, %v3630_v33  ;;  %v3678_v29 = vld [vmem:[#allocation2 + $0x54c] sm:$0xf0]  ;;  %v4325_v33 = vld [vmem:[#allocation2 + $0xb8] sm:$0xf0] }
  0x86   :  { %1938 = vmatpush.bf16.msrb.mxu0 %v3249_v57  ;;  %v4422_v57 = vld [vmem:[#allocation2 + $0x3c4] sm:$0xf]  ;;  %v3765_v63 = vor.u32 %v4491_v51, %v3762_v52  ;;  %v3714_v51 = vld [vmem:[#allocation2 + $0x594] sm:$0xf0]  ;;  %v4503_v52 = vld [vmem:[#allocation2 + $0x64c] sm:$0xf] }
  0x87   :  { %1951 = vmatpush.bf16.msrb.mxu1 %v3345_v58  ;;  %v3486_v58 = vld [vmem:[#allocation2 + $0x3cc] sm:$0xf0] }
  0x88   :  { %1964 = vmatpush.bf16.msrb.mxu2 %v3441_v60  ;;  %v3669_v60 = vor.u32 %v4467_v48, %v3666_v50  ;;  %v3489_v4 = vor.u32 %v4422_v57, %v3486_v58  ;;  %v3618_v48 = vld [vmem:[#allocation2 + $0x4d4] sm:$0xf0]  ;;  %v4479_v50 = vld [vmem:[#allocation2 + $0x58c] sm:$0xf]  ;;  %v3096_v32 = vld [vmem:[#allocation2 + $0xb0] sm:$0xf] }
  0x89   :  { %1977 = vmatpush.bf16.msrb.mxu3 %v3537_v0  ;;  %v3861_v0 = vor.u32 %v4515_v53, %v3858_v54  ;;  %v3810_v53 = vld [vmem:[#allocation2 + $0x654] sm:$0xf0]  ;;  %v3717_v58 = vor.u32 %v4479_v50, %v3714_v51  ;;  %v3384_v50 = vld [vmem:[#allocation2 + $0x2f0] sm:$0xf]  ;;  %v4397_v51 = vld [vmem:[#allocation2 + $0x2f8] sm:$0xf0] }
  0x8a   :  { %1939 = vmatpush.bf16.msrb.mxu0 %v3237_v5  ;;  %v3750_v5 = vld [vmem:[#allocation2 + $0x5dc] sm:$0xf0]  ;;  %v3906_v57 = vld [vmem:[#allocation2 + $0x714] sm:$0xf0] }
  0x8b   :  { %1952 = vmatpush.bf16.msrb.mxu1 %v3333_v7  ;;  %v4512_v7 = vld [vmem:[#allocation2 + $0x694] sm:$0xf] }
  0x8c   :  { %1965 = vmatpush.bf16.msrb.mxu2 %v3429_v9  ;;  %v3957_v9 = vor.u32 %v4539_v61, %v3954_v62  ;;  %v3849_v15 = vor.u32 %v4512_v7, %v3846_v8  ;;  %v3606_v61 = vld [vmem:[#allocation2 + $0x4bc] sm:$0xf0]  ;;  %v4476_v62 = vld [vmem:[#allocation2 + $0x574] sm:$0xf] }
  0x8d   :  { %1978 = vmatpush.bf16.msrb.mxu3 %v3525_v14  ;;  %v3753_v14 = vor.u32 %v4488_v3, %v3750_v5  ;;  %v3894_v5 = vld [vmem:[#allocation2 + $0x6fc] sm:$0xf0] }
  0x8e   :  { %1940 = vmatpush.bf16.msrb.mxu0 %v3225_v19  ;;  %v3738_v19 = vld [vmem:[#allocation2 + $0x5c4] sm:$0xf0] }
  0x8f   :  { %1953 = vmatpush.bf16.msrb.mxu1 %v3321_v23  ;;  %v4509_v23 = vld [vmem:[#allocation2 + $0x67c] sm:$0xf] }
  0x90   :  { %1966 = vmatpush.bf16.msrb.mxu2 %v3417_v25  ;;  %v3945_v25 = vor.u32 %v4536_v11, %v3942_v12  ;;  %v3837_v31 = vor.u32 %v4509_v23, %v3834_v24  ;;  %v4473_v11 = vld [vmem:[#allocation2 + $0x55c] sm:$0xf]  ;;  %v3690_v12 = vld [vmem:[#allocation2 + $0x564] sm:$0xf0]  ;;  %v4446_v23 = vld [vmem:[#allocation2 + $0x484] sm:$0xf] }
  0x91   :  { %1979 = vmatpush.bf16.msrb.mxu3 %v3513_v30  ;;  %v3741_v30 = vor.u32 %v4485_v18, %v3738_v19  ;;  %v3882_v19 = vld [vmem:[#allocation2 + $0x6e4] sm:$0xf0]  ;;  %v3582_v24 = vld [vmem:[#allocation2 + $0x48c] sm:$0xf0] }
  0x92   :  { %1941 = vmatpush.bf16.msrb.mxu0 %v3213_v35  ;;  %v3726_v35 = vld [vmem:[#allocation2 + $0x5ac] sm:$0xf0] }
  0x93   :  { %1954 = vmatpush.bf16.msrb.mxu1 %v3309_v37  ;;  %v4506_v37 = vld [vmem:[#allocation2 + $0x664] sm:$0xf]  ;;  %v3729_v45 = vor.u32 %v4482_v34, %v3726_v35  ;;  %v3885_v34 = vor.u32 %v4521_v17, %v3882_v19  ;;  %v3192_v35 = vld [vmem:[#allocation2 + $0x170] sm:$0xf]  ;;  %v4316_v17 = vld [vmem:[#allocation2 + $0x70] sm:$0xf0] }
  0x94   :  { %1967 = vmatpush.bf16.msrb.mxu2 %v3405_v42  ;;  %v4530_v42 = vld [vmem:[#allocation2 + $0x724] sm:$0xf]  ;;  %v3825_v46 = vor.u32 %v4506_v37, %v3822_v38  ;;  %v4349_v37 = vld [vmem:[#allocation2 + $0x178] sm:$0xf0]  ;;  %v3288_v38 = vld [vmem:[#allocation2 + $0x230] sm:$0xf] }
  0x95   :  { %1980 = vmatpush.bf16.msrb.mxu3 %v3501_v47  ;;  %v4455_v47 = vld [vmem:[#allocation2 + $0x4cc] sm:$0xf]  ;;  %v3921_v54 = vor.u32 %v4530_v42, %v3918_v44  ;;  %v4518_v42 = vld [vmem:[#allocation2 + $0x6c4] sm:$0xf]  ;;  %v3870_v44 = vld [vmem:[#allocation2 + $0x6cc] sm:$0xf0] }
  0x96   :  { %1942 = vmatpush.bf16.msrb.mxu0 %v3201_v55  ;;  %v3621_v55 = vor.u32 %v4455_v47, %v3618_v48  ;;  %v3097_v47 = vor.u32 %v4325_v33, %v3096_v32  ;;  %v3193_v48 = vor.u32 %v4349_v37, %v3192_v35  ;;  %v4340_v19 = vld [vmem:[#allocation2 + $0x130] sm:$0xf0]  ;;  %v3048_v32 = vld [vmem:[#allocation2 + $0x50] sm:$0xf]  ;;  %v4313_v33 = vld [vmem:[#allocation2 + $0x58] sm:$0xf0] }
  0x97   :  { %1955 = vmatpush.bf16.msrb.mxu1 %v3297_v56  ;;  %v4527_v56 = vld [vmem:[#allocation2 + $0x70c] sm:$0xf]  ;;  %v4337_v35 = vld [vmem:[#allocation2 + $0x118] sm:$0xf0]  ;;  %v3240_v37 = vld [vmem:[#allocation2 + $0x1d0] sm:$0xf] }
  0x98   :  { %1968 = vmatpush.bf16.msrb.mxu2 %v3393_v59  ;;  %v3813_v59 = vor.u32 %v4503_v52, %v3810_v53  ;;  %v3909_v2 = vor.u32 %v4527_v56, %v3906_v57  ;;  %v3873_v53 = vor.u32 %v4518_v42, %v3870_v44  ;;  %v3180_v56 = vld [vmem:[#allocation2 + $0x158] sm:$0xf]  ;;  %v4346_v57 = vld [vmem:[#allocation2 + $0x160] sm:$0xf0]  ;;  %v3336_v42 = vld [vmem:[#allocation2 + $0x290] sm:$0xf] }
  0x99   :  { %1981 = vmatpush.bf16.msrb.mxu3 %v3489_v4  ;;  %1943 = vmatmul.bf16.vlgmr.msrb.gmra.mxu0 %v4879_v6  ;;  %v4524_v4 = vld [vmem:[#allocation2 + $0x6f4] sm:$0xf]  ;;  %v4385_v44 = vld [vmem:[#allocation2 + $0x298] sm:$0xf0] }
  0x9a   :  { %1987 = vmatpush.bf16.msra.mxu0 %v3669_v60  ;;  %1956 = vmatmul.bf16.vlgmr.msrb.gmra.mxu1 %v4884_v13  ;;  %v4452_v60 = vld [vmem:[#allocation2 + $0x4b4] sm:$0xf]  ;;  %v3897_v16 = vor.u32 %v4524_v4, %v3894_v5  ;;  %v3168_v4 = vld [vmem:[#allocation2 + $0x140] sm:$0xf]  ;;  %v4343_v5 = vld [vmem:[#allocation2 + $0x148] sm:$0xf0] }
  0x9b   :  { %2000 = vmatpush.bf16.msra.mxu1 %v3765_v63  ;;  %1969 = vmatmul.bf16.vlgmr.msrb.gmra.mxu2 %v4900_v36  ;;  %v3702_v63 = vld [vmem:[#allocation2 + $0x57c] sm:$0xf0]  ;;  %v3609_v3 = vor.u32 %v4452_v60, %v3606_v61  ;;  %v3385_v60 = vor.u32 %v4397_v51, %v3384_v50  ;;  %v3132_v50 = vld [vmem:[#allocation2 + $0xf8] sm:$0xf]  ;;  %v4334_v51 = vld [vmem:[#allocation2 + $0x100] sm:$0xf0] }
  0x9c   :  { %2013 = vmatpush.bf16.msra.mxu2 %v3861_v0  ;;  %1982 = vmatmul.bf16.vlgmr.msrb.gmra.mxu3 %v4904_v43  ;;  %v4500_v0 = vld [vmem:[#allocation2 + $0x634] sm:$0xf]  ;;  %v3705_v7 = vor.u32 %v4476_v62, %v3702_v63  ;;  %v3372_v62 = vld [vmem:[#allocation2 + $0x2d8] sm:$0xf]  ;;  %v4394_v63 = vld [vmem:[#allocation2 + $0x2e0] sm:$0xf0] }
  0x9d   :  { %2026 = vmatpush.bf16.msra.mxu3 %v3957_v9  ;;  %v3801_v8 = vor.u32 %v4500_v0, %v3798_v1  ;;  %v4449_v9 = vld [vmem:[#allocation2 + $0x49c] sm:$0xf]  ;;  %v3181_v0 = vor.u32 %v4346_v57, %v3180_v56  ;;  %v3324_v56 = vld [vmem:[#allocation2 + $0x278] sm:$0xf]  ;;  %v4382_v57 = vld [vmem:[#allocation2 + $0x280] sm:$0xf0] }
  0x9e   :  { %1988 = vmatpush.bf16.msra.mxu0 %v3657_v10  ;;  %v3594_v10 = vld [vmem:[#allocation2 + $0x4a4] sm:$0xf0] }
  0x9f   :  { %2001 = vmatpush.bf16.msra.mxu1 %v3753_v14  ;;  %v4497_v14 = vld [vmem:[#allocation2 + $0x61c] sm:$0xf]  ;;  %v3597_v18 = vor.u32 %v4449_v9, %v3594_v10  ;;  %v3373_v9 = vor.u32 %v4394_v63, %v3372_v62  ;;  %v4307_v62 = vld [vmem:[#allocation2 + $0x28] sm:$0xf0]  ;;  %v3120_v63 = vld [vmem:[#allocation2 + $0xe0] sm:$0xf] }
  0xa0   :  { %2014 = vmatpush.bf16.msra.mxu2 %v3849_v15  ;;  %v3786_v15 = vld [vmem:[#allocation2 + $0x624] sm:$0xf0] }
  0xa1   :  { %2027 = vmatpush.bf16.msra.mxu3 %v3945_v25  ;;  %v3693_v25 = vor.u32 %v4473_v11, %v3690_v12  ;;  %v3360_v11 = vld [vmem:[#allocation2 + $0x2c0] sm:$0xf]  ;;  %v4391_v12 = vld [vmem:[#allocation2 + $0x2c8] sm:$0xf0] }
  0xa2   :  { %1989 = vmatpush.bf16.msra.mxu0 %v3645_v27  ;;  %v3789_v27 = vor.u32 %v4497_v14, %v3786_v15  ;;  %v3169_v14 = vor.u32 %v4343_v5, %v3168_v4  ;;  %v3325_v4 = vor.u32 %v4382_v57, %v3324_v56  ;;  %v3012_v5 = vld [vmem:[#allocation2 + $0x8] sm:$0xf]  ;;  %v3756_v57 = vld [vmem:[#allocation2 + $0x5d8] sm:$0xf] }
  0xa3   :  { %2002 = vmatpush.bf16.msra.mxu1 %v3741_v30  ;;  %v4494_v30 = vld [vmem:[#allocation2 + $0x604] sm:$0xf] }
  0xa4   :  { %2015 = vmatpush.bf16.msra.mxu2 %v3837_v31  ;;  %v3774_v31 = vld [vmem:[#allocation2 + $0x60c] sm:$0xf0] }
  0xa5   :  { %2028 = vmatpush.bf16.msra.mxu3 %v3933_v40  ;;  %v3585_v40 = vor.u32 %v4446_v23, %v3582_v24  ;;  %v3252_v23 = vld [vmem:[#allocation2 + $0x1e8] sm:$0xf]  ;;  %v4364_v24 = vld [vmem:[#allocation2 + $0x1f0] sm:$0xf0] }
  0xa6   :  { %1990 = vmatpush.bf16.msra.mxu0 %v3633_v41  ;;  %v4373_v41 = vld [vmem:[#allocation2 + $0x238] sm:$0xf0] }
  0xa7   :  { %2003 = vmatpush.bf16.msra.mxu1 %v3729_v45  ;;  %v3681_v45 = vor.u32 %v4470_v28, %v3678_v29  ;;  %v3289_v52 = vor.u32 %v4373_v41, %v3288_v38  ;;  %v3348_v28 = vld [vmem:[#allocation2 + $0x2a8] sm:$0xf]  ;;  %v4388_v29 = vld [vmem:[#allocation2 + $0x2b0] sm:$0xf0]  ;;  %v4361_v38 = vld [vmem:[#allocation2 + $0x1d8] sm:$0xf0]  ;;  %v3049_v41 = vor.u32 %v4313_v33, %v3048_v32 }
  0xa8   :  { %2016 = vmatpush.bf16.msra.mxu2 %v3825_v46  ;;  %v3777_v46 = vor.u32 %v4494_v30, %v3774_v31  ;;  %v3253_v31 = vor.u32 %v4364_v24, %v3252_v23  ;;  %v3480_v23 = vld [vmem:[#allocation2 + $0x3b0] sm:$0xf]  ;;  %v4421_v24 = vld [vmem:[#allocation2 + $0x3b8] sm:$0xf0]  ;;  %v3300_v32 = vld [vmem:[#allocation2 + $0x248] sm:$0xf] }
  0xa9   :  { %2029 = vmatpush.bf16.msra.mxu3 %v3921_v54  ;;  %v3084_v54 = vld [vmem:[#allocation2 + $0x98] sm:$0xf]  ;;  %v4376_v33 = vld [vmem:[#allocation2 + $0x250] sm:$0xf0] }
  0xaa   :  { %1991 = vmatpush.bf16.msra.mxu0 %v3621_v55  ;;  %v4322_v55 = vld [vmem:[#allocation2 + $0xa0] sm:$0xf0] }
  0xab   :  { %2004 = vmatpush.bf16.msra.mxu1 %v3717_v58  ;;  %v3276_v58 = vld [vmem:[#allocation2 + $0x218] sm:$0xf]  ;;  %v3085_v61 = vor.u32 %v4322_v55, %v3084_v54  ;;  %v3337_v54 = vor.u32 %v4385_v44, %v3336_v42  ;;  %v3481_v42 = vor.u32 %v4421_v24, %v3480_v23  ;;  %v4460_v23 = vld [vmem:[#allocation2 + $0x4f0] sm:$0xf0] }
  0xac   :  { %2017 = vmatpush.bf16.msra.mxu2 %v3813_v59  ;;  %v4370_v59 = vld [vmem:[#allocation2 + $0x220] sm:$0xf0] }
  0xad   :  { %2030 = vmatpush.bf16.msra.mxu3 %v3909_v2  ;;  %v3277_v1 = vor.u32 %v4370_v59, %v3276_v58  ;;  %v3072_v2 = vld [vmem:[#allocation2 + $0x80] sm:$0xf]  ;;  %v3133_v59 = vor.u32 %v4334_v51, %v3132_v50  ;;  %v3564_v50 = vld [vmem:[#allocation2 + $0x458] sm:$0xf]  ;;  %v4442_v51 = vld [vmem:[#allocation2 + $0x460] sm:$0xf0] }
  0xae   :  { %1992 = vmatpush.bf16.msra.mxu0 %v3609_v3  ;;  %v4319_v3 = vld [vmem:[#allocation2 + $0x88] sm:$0xf0] }
  0xaf   :  { %2005 = vmatpush.bf16.msra.mxu1 %v3705_v7  ;;  %v3264_v7 = vld [vmem:[#allocation2 + $0x200] sm:$0xf]  ;;  %v3073_v10 = vor.u32 %v4319_v3, %v3072_v2  ;;  %v4355_v3 = vld [vmem:[#allocation2 + $0x1a8] sm:$0xf0] }
  0xb0   :  { %2018 = vmatpush.bf16.msra.mxu2 %v3801_v8  ;;  %v4367_v8 = vld [vmem:[#allocation2 + $0x208] sm:$0xf0]  ;;  %v3216_v2 = vld [vmem:[#allocation2 + $0x1a0] sm:$0xf] }
  0xb1   :  { %2031 = vmatpush.bf16.msra.mxu3 %v3897_v16  ;;  %v3265_v15 = vor.u32 %v4367_v8, %v3264_v7  ;;  %v3060_v16 = vld [vmem:[#allocation2 + $0x68] sm:$0xf] }
  0xb2   :  { %1993 = vmatpush.bf16.msra.mxu0 %v3597_v18  ;;  %v3156_v18 = vld [vmem:[#allocation2 + $0x128] sm:$0xf] }
  0xb3   :  { %2006 = vmatpush.bf16.msra.mxu1 %v3693_v25  ;;  %v3361_v25 = vor.u32 %v4391_v12, %v3360_v11  ;;  %v3157_v30 = vor.u32 %v4340_v19, %v3156_v18  ;;  %v4379_v11 = vld [vmem:[#allocation2 + $0x268] sm:$0xf0]  ;;  %v3204_v18 = vld [vmem:[#allocation2 + $0x188] sm:$0xf]  ;;  %v4352_v19 = vld [vmem:[#allocation2 + $0x190] sm:$0xf0] }
  0xb4   :  { %2019 = vmatpush.bf16.msra.mxu2 %v3789_v27  ;;  %v3061_v27 = vor.u32 %v4316_v17, %v3060_v16  ;;  %v3108_v16 = vld [vmem:[#allocation2 + $0xc8] sm:$0xf]  ;;  %v4328_v17 = vld [vmem:[#allocation2 + $0xd0] sm:$0xf0] }
  0xb5   :  { %2032 = vmatpush.bf16.msra.mxu3 %v3885_v34  ;;  %v3144_v34 = vld [vmem:[#allocation2 + $0x110] sm:$0xf] }
  0xb6   :  { %1994 = vmatpush.bf16.msra.mxu0 %v3585_v40  ;;  %v3349_v40 = vor.u32 %v4388_v29, %v3348_v28  ;;  %v4445_v28 = vld [vmem:[#allocation2 + $0x478] sm:$0xf0]  ;;  %v3672_v29 = vld [vmem:[#allocation2 + $0x530] sm:$0xf] }
  0xb7   :  { %2007 = vmatpush.bf16.msra.mxu1 %v3681_v45  ;;  %v3145_v45 = vor.u32 %v4337_v35, %v3144_v34  ;;  %v3109_v35 = vor.u32 %v4328_v17, %v3108_v16  ;;  %v4412_v17 = vld [vmem:[#allocation2 + $0x370] sm:$0xf0] }
  0xb8   :  { %2020 = vmatpush.bf16.msra.mxu2 %v3777_v46  ;;  %v3241_v46 = vor.u32 %v4361_v38, %v3240_v37  ;;  %v3205_v37 = vor.u32 %v4352_v19, %v3204_v18  ;;  %v3768_v38 = vld [vmem:[#allocation2 + $0x5f0] sm:$0xf]  ;;  %v3540_v18 = vld [vmem:[#allocation2 + $0x428] sm:$0xf]  ;;  %v4436_v19 = vld [vmem:[#allocation2 + $0x430] sm:$0xf0] }
  0xb9   :  { %2033 = vmatpush.bf16.msra.mxu3 %v3873_v53  ;;  %1995 = vmatmul.bf16.vlgmr.msra.gmra.mxu0 %v4902_v39  ;;  %v4358_v53 = vld [vmem:[#allocation2 + $0x1c0] sm:$0xf0] }
  0xba   :  { %2039 = vmatpush.bf16.msrb.mxu0 %v3097_v47  ;;  %2008 = vmatmul.bf16.vlgmr.msra.gmra.mxu1 %v4907_v49  ;;  %v3036_v47 = vld [vmem:[#allocation2 + $0x38] sm:$0xf]  ;;  %v4931_v58 = vpop.f32.mrf.mxu0 }
  0xbb   :  { %2052 = vmatpush.bf16.msrb.mxu1 %v3193_v48  ;;  %2021 = vmatmul.bf16.vlgmr.msra.gmra.mxu2 %v4915_v22  ;;  %v4310_v48 = vld [vmem:[#allocation2 + $0x40] sm:$0xf0] }
  0xbc   :  { %2065 = vmatpush.bf16.msrb.mxu2 %v3289_v52  ;;  %2034 = vmatmul.bf16.vlgmr.msra.gmra.mxu3 %v4917_v26  ;;  %v3228_v52 = vld [vmem:[#allocation2 + $0x1b8] sm:$0xf]  ;;  %v3037_v55 = vor.u32 %v4310_v48, %v3036_v47  ;;  %v3301_v47 = vor.u32 %v4376_v33, %v3300_v32  ;;  %v4418_v48 = vld [vmem:[#allocation2 + $0x3a0] sm:$0xf0]  ;;  %v3528_v32 = vld [vmem:[#allocation2 + $0x410] sm:$0xf] }
  0xbd   :  { %2078 = vmatpush.bf16.msrb.mxu3 %v3385_v60  ;;  %v3229_v60 = vor.u32 %v4358_v53, %v3228_v52  ;;  %v3660_v53 = vld [vmem:[#allocation2 + $0x518] sm:$0xf]  ;;  %v4433_v33 = vld [vmem:[#allocation2 + $0x418] sm:$0xf0] }
  0xbe   :  { %2040 = vmatpush.bf16.msrb.mxu0 %v3085_v61  ;;  %v3024_v61 = vld [vmem:[#allocation2 + $0x20] sm:$0xf]  ;;  %v4935_v7 = vpop.f32.mrf.mxu2 }
  0xbf   :  { %2053 = vmatpush.bf16.msrb.mxu1 %v3181_v0  ;;  %v4933_v0 = vpop.f32.mrf.mxu1  ;;  %v3025_v8 = vor.u32 %v4307_v62, %v3024_v61  ;;  %v4937_v12 = vpop.f32.mrf.mxu3  ;;  %v3565_v61 = vor.u32 %v4442_v51, %v3564_v50  ;;  %v3456_v62 = vld [vmem:[#allocation2 + $0x380] sm:$0xf]  ;;  %v4430_v50 = vld [vmem:[#allocation2 + $0x400] sm:$0xf0]  ;;  %v3612_v51 = vld [vmem:[#allocation2 + $0x4b8] sm:$0xf] }
  0xc0   :  { %2066 = vmatpush.bf16.msrb.mxu2 %v3277_v1  ;;  %v4331_v1 = vld [vmem:[#allocation2 + $0xe8] sm:$0xf0] }
  0xc1   :  { %2079 = vmatpush.bf16.msrb.mxu3 %v3373_v9  ;;  %v4304_v9 = vld [vmem:[#allocation2 + $0x10] sm:$0xf0] }
  0xc2   :  { %2041 = vmatpush.bf16.msrb.mxu0 %v3073_v10  ;;  %v3312_v10 = vld [vmem:[#allocation2 + $0x260] sm:$0xf]  ;;  %v1790_v34 = vpop.f32.mrf.mxu0 }
  0xc3   :  { %2054 = vmatpush.bf16.msrb.mxu1 %v3169_v14  ;;  %v3121_v14 = vor.u32 %v4331_v1, %v3120_v63  ;;  %v4415_v1 = vld [vmem:[#allocation2 + $0x388] sm:$0xf0]  ;;  %v4457_v34 = vld [vmem:[#allocation2 + $0x4d8] sm:$0xf0] }
  0xc4   :  { %2067 = vmatpush.bf16.msrb.mxu2 %v3265_v15  ;;  %v3217_v15 = vor.u32 %v4355_v3, %v3216_v2  ;;  %v3552_v2 = vld [vmem:[#allocation2 + $0x440] sm:$0xf]  ;;  %v4439_v3 = vld [vmem:[#allocation2 + $0x448] sm:$0xf0] }
  0xc5   :  { %2080 = vmatpush.bf16.msrb.mxu3 %v3361_v25  ;;  %v3313_v25 = vor.u32 %v4379_v11, %v3312_v10  ;;  %v4487_v10 = vld [vmem:[#allocation2 + $0x5c8] sm:$0xf0]  ;;  %v3457_v11 = vor.u32 %v4415_v1, %v3456_v62 }
  0xc6   :  { %2042 = vmatpush.bf16.msrb.mxu0 %v3061_v27  ;;  %v3576_v27 = vld [vmem:[#allocation2 + $0x470] sm:$0xf]  ;;  %v1816_v52 = vpop.f32.mrf.mxu2  ;;  %v4403_v1 = vld [vmem:[#allocation2 + $0x328] sm:$0xf0] }
  0xc7   :  { %2055 = vmatpush.bf16.msrb.mxu1 %v3157_v30  ;;  %v3013_v30 = vor.u32 %v4304_v9, %v3012_v5  ;;  %v3577_v44 = vor.u32 %v4445_v28, %v3576_v27  ;;  %v1829_v56 = vpop.f32.mrf.mxu3  ;;  %v4463_v5 = vld [vmem:[#allocation2 + $0x508] sm:$0xf0]  ;;  %v3744_v9 = vld [vmem:[#allocation2 + $0x5c0] sm:$0xf]  ;;  %v3541_v27 = vor.u32 %v4436_v19, %v3540_v18  ;;  %v3432_v28 = vld [vmem:[#allocation2 + $0x350] sm:$0xf] }
  0xc8   :  { %2068 = vmatpush.bf16.msrb.mxu2 %v3253_v31  ;;  %v4469_v31 = vld [vmem:[#allocation2 + $0x538] sm:$0xf0]  ;;  %v3745_v24 = vor.u32 %v4487_v10, %v3744_v9  ;;  %v4454_v52 = vld [vmem:[#allocation2 + $0x4c0] sm:$0xf0]  ;;  %v4400_v19 = vld [vmem:[#allocation2 + $0x310] sm:$0xf0] }
  0xc9   :  { %2081 = vmatpush.bf16.msrb.mxu3 %v3349_v40  ;;  %v4493_v40 = vld [vmem:[#allocation2 + $0x5f8] sm:$0xf0]  ;;  %v4478_v56 = vld [vmem:[#allocation2 + $0x580] sm:$0xf0] }
  0xca   :  { %2043 = vmatpush.bf16.msrb.mxu0 %v3049_v41  ;;  %v1803_v41 = vpop.f32.mrf.mxu1 }
  0xcb   :  { %2056 = vmatpush.bf16.msrb.mxu1 %v3145_v45  ;;  %v3468_v45 = vld [vmem:[#allocation2 + $0x398] sm:$0xf]  ;;  %v4950_v41 = vld [vmem:[%s5057_s3] sm:$0x7] }
  0xcc   :  { %2069 = vmatpush.bf16.msrb.mxu2 %v3241_v46  ;;  %v3673_v46 = vor.u32 %v4469_v31, %v3672_v29  ;;  %v4409_v31 = vld [vmem:[#allocation2 + $0x358] sm:$0xf0] }
  0xcd   :  { %2082 = vmatpush.bf16.msrb.mxu3 %v3337_v54  ;;  %v4466_v54 = vld [vmem:[#allocation2 + $0x520] sm:$0xf0] }
  0xce   :  { %2044 = vmatpush.bf16.msrb.mxu0 %v3037_v55  ;;  %v3769_v55 = vor.u32 %v4493_v40, %v3768_v38  ;;  %v3661_v63 = vor.u32 %v4466_v54, %v3660_v53  ;;  %v3720_v38 = vld [vmem:[#allocation2 + $0x590] sm:$0xf]  ;;  %v4481_v40 = vld [vmem:[#allocation2 + $0x598] sm:$0xf0] }
  0xcf   :  { %2057 = vmatpush.bf16.msrb.mxu1 %v3133_v59  ;;  %v4490_v59 = vld [vmem:[#allocation2 + $0x5e0] sm:$0xf0]  ;;  %v3721_v53 = vor.u32 %v4481_v40, %v3720_v38  ;;  %v3684_v40 = vld [vmem:[#allocation2 + $0x548] sm:$0xf] }
  0xd0   :  { %2070 = vmatpush.bf16.msrb.mxu2 %v3229_v60  ;;  %v3469_v60 = vor.u32 %v4418_v48, %v3468_v45  ;;  %v3420_v45 = vld [vmem:[#allocation2 + $0x338] sm:$0xf] }
  0xd1   :  { %2083 = vmatpush.bf16.msrb.mxu3 %v3325_v4  ;;  %v3648_v4 = vld [vmem:[#allocation2 + $0x500] sm:$0xf]  ;;  %v3516_v48 = vld [vmem:[#allocation2 + $0x3f8] sm:$0xf] }
  0xd2   :  { %2045 = vmatpush.bf16.msrb.mxu0 %v3025_v8  ;;  %v3757_v8 = vor.u32 %v4490_v59, %v3756_v57  ;;  %v3649_v16 = vor.u32 %v4463_v5, %v3648_v4  ;;  %v458_v57 = vperm.slane %v4950_v41, 0  ;;  %v3600_v5 = vld [vmem:[#allocation2 + $0x4a0] sm:$0xf] }
  0xd3   :  { %2058 = vmatpush.bf16.msrb.mxu1 %v3121_v14  ;;  %v3553_v14 = vor.u32 %v4439_v3, %v3552_v2  ;;  %v3504_v2 = vld [vmem:[#allocation2 + $0x3e0] sm:$0xf]  ;;  %v4427_v3 = vld [vmem:[#allocation2 + $0x3e8] sm:$0xf0] }
  0xd4   :  { %2071 = vmatpush.bf16.msrb.mxu2 %v3217_v15  ;;  %v3444_v15 = vld [vmem:[#allocation2 + $0x368] sm:$0xf]  ;;  %v3505_v18 = vor.u32 %v4427_v3, %v3504_v2  ;;  %v4511_v2 = vld [vmem:[#allocation2 + $0x688] sm:$0xf0]  ;;  %v3936_v3 = vld [vmem:[#allocation2 + $0x740] sm:$0xf] }
  0xd5   :  { %2084 = vmatpush.bf16.msrb.mxu3 %v3313_v25  ;;  %v3732_v25 = vld [vmem:[#allocation2 + $0x5a8] sm:$0xf] }
  0xd6   :  { %2046 = vmatpush.bf16.msrb.mxu0 %v3013_v30  ;;  %v4943_v29 = vpop.f32.mrf.mxu0 }
  0xd7   :  { %2059 = vmatpush.bf16.msrb.mxu1 %v3109_v35 }
  0xd8   :  { %2072 = vmatpush.bf16.msrb.mxu2 %v3205_v37  ;;  %v4945_v37 = vpop.f32.mrf.mxu1 }
  0xd9   :  { %2085 = vmatpush.bf16.msrb.mxu3 %v3301_v47  ;;  %2047 = vmatmul.bf16.vlgmr.msrb.gmra.mxu0 %v4887_v20  ;;  %v4484_v20 = vld [vmem:[#allocation2 + $0x5b0] sm:$0xf0]  ;;  %v4406_v47 = vld [vmem:[#allocation2 + $0x340] sm:$0xf0] }
  0xda   :  { %2091 = vmatpush.bf16.msra.mxu0 %v3481_v42  ;;  %2060 = vmatmul.bf16.vlgmr.msrb.gmra.mxu1 %v4890_v21  ;;  %v3445_v21 = vor.u32 %v4412_v17, %v3444_v15  ;;  %v3733_v35 = vor.u32 %v4484_v20, %v3732_v25  ;;  %v3433_v42 = vor.u32 %v4409_v31, %v3432_v28  ;;  %v4475_v15 = vld [vmem:[#allocation2 + $0x568] sm:$0xf0]  ;;  %v3492_v25 = vld [vmem:[#allocation2 + $0x3c8] sm:$0xf]  ;;  %v4424_v20 = vld [vmem:[#allocation2 + $0x3d0] sm:$0xf0] }
  0xdb   :  { %2104 = vmatpush.bf16.msra.mxu1 %v3577_v44  ;;  %2073 = vmatmul.bf16.vlgmr.msrb.gmra.mxu2 %v4879_v6  ;;  %v3636_v6 = vld [vmem:[#allocation2 + $0x4e8] sm:$0xf]  ;;  %v3529_v44 = vor.u32 %v4433_v33, %v3528_v32  ;;  %v3421_v59 = vor.u32 %v4406_v47, %v3420_v45  ;;  %v3864_v28 = vld [vmem:[#allocation2 + $0x6b0] sm:$0xf]  ;;  %v4541_v32 = vld [vmem:[#allocation2 + $0x778] sm:$0xf0]  ;;  %v3493_v38 = vor.u32 %v4424_v20, %v3492_v25 }
  0xdc   :  { %2117 = vmatpush.bf16.msra.mxu2 %v3673_v46  ;;  %2086 = vmatmul.bf16.vlgmr.msrb.gmra.mxu3 %v4884_v13  ;;  %v3637_v30 = vor.u32 %v4460_v23, %v3636_v6  ;;  %v3624_v13 = vld [vmem:[#allocation2 + $0x4d0] sm:$0xf]  ;;  %v3964_v6 = vld [vmem:[%s5059_s5] sm:$0xf]  ;;  %v4591_v23 = vld [vmem:[%s5059_s5 + $0x4] sm:$0x10] }
  0xdd   :  { %2130 = vmatpush.bf16.msra.mxu3 %v3769_v55  ;;  %v3625_v46 = vor.u32 %v4457_v34, %v3624_v13  ;;  %v3708_v55 = vld [vmem:[#allocation2 + $0x578] sm:$0xf]  ;;  %v3960_v31 = vld [vmem:[#allocation2 + $0x770] sm:$0xf]  ;;  %v3965_v33 = vor.u32 %v4591_v23, %v3964_v6  ;;  %v4551_v23 = vld [vmem:[#allocation4 + $0x44] sm:$0xf0] }
  0xde   :  { %2092 = vmatpush.bf16.msra.mxu0 %v3469_v60  ;;  %v4952_v54 = vpop.f32.mrf.mxu2  ;;  %v3517_v60 = vor.u32 %v4430_v50, %v3516_v48  ;;  %v1842_v62 = vpop.f32.mrf.mxu0  ;;  %v3709_v9 = vor.u32 %v4478_v56, %v3708_v55  ;;  %v3961_v47 = vor.u32 %v4541_v32, %v3960_v31  ;;  %v4557_v48 = vld [vmem:[#allocation4 + $0x74] sm:$0xf0]  ;;  %v4538_v56 = vld [vmem:[#allocation2 + $0x760] sm:$0xf0]  ;;  %v4505_v25 = vld [vmem:[#allocation2 + $0x658] sm:$0xf0] }
  0xdf   :  { %2105 = vmatpush.bf16.msra.mxu1 %v3565_v61  ;;  %v3408_v61 = vld [vmem:[#allocation2 + $0x320] sm:$0xf]  ;;  %v4955_v4 = vpop.f32.mrf.mxu3  ;;  %v3852_v50 = vld [vmem:[#allocation2 + $0x698] sm:$0xf]  ;;  %v3912_v20 = vld [vmem:[#allocation2 + $0x710] sm:$0xf] }
  0xe0   :  { %2118 = vmatpush.bf16.msra.mxu2 %v3661_v63  ;;  %v3613_v63 = vor.u32 %v4454_v52, %v3612_v51  ;;  %v1855_v10 = vpop.f32.mrf.mxu1  ;;  %v3409_v17 = vor.u32 %v4403_v1, %v3408_v61  ;;  %v4514_v51 = vld [vmem:[#allocation2 + $0x6a0] sm:$0xf0]  ;;  %v3948_v55 = vld [vmem:[#allocation2 + $0x758] sm:$0xf]  ;;  %v4022_v61 = vld [vmem:[#allocation4 + $0x60] sm:$0xf] }
  0xe1   :  { %2131 = vmatpush.bf16.msra.mxu3 %v3757_v8  ;;  %v4451_v8 = vld [vmem:[#allocation2 + $0x4a8] sm:$0xf0]  ;;  %v3949_v62 = vor.u32 %v4538_v56, %v3948_v55  ;;  %v3840_v1 = vld [vmem:[#allocation2 + $0x680] sm:$0xf]  ;;  %v4014_v10 = vld [vmem:[#allocation4 + $0x50] sm:$0xf] }
  0xe2   :  { %2093 = vmatpush.bf16.msra.mxu0 %v3457_v11  ;;  %v3396_v11 = vld [vmem:[#allocation2 + $0x308] sm:$0xf]  ;;  %v4549_v32 = vld [vmem:[#allocation4 + $0x34] sm:$0xf0]  ;;  %v4523_v55 = vld [vmem:[#allocation2 + $0x6e8] sm:$0xf0] }
  0xe3   :  { %2106 = vmatpush.bf16.msra.mxu1 %v3553_v14  ;;  %v3696_v14 = vld [vmem:[#allocation2 + $0x560] sm:$0xf] }
  0xe4   :  { %2119 = vmatpush.bf16.msra.mxu2 %v3649_v16  ;;  %v1789_v16 = vadd.f32 %v4931_v58, %v458_v57  ;;  %v4448_v58 = vld [vmem:[#allocation2 + $0x490] sm:$0xf0] }
  0xe5   :  { %2132 = vmatpush.bf16.msra.mxu3 %v3745_v24  ;;  %v3601_v24 = vor.u32 %v4451_v8, %v3600_v5  ;;  %v4535_v5 = vld [vmem:[#allocation2 + $0x748] sm:$0xf0] }
  0xe6   :  { %2094 = vmatpush.bf16.msra.mxu0 %v3445_v21  ;;  %v3588_v21 = vld [vmem:[#allocation2 + $0x488] sm:$0xf]  ;;  %v1868_v13 = vpop.f32.mrf.mxu2  ;;  %v1802_v34 = vadd.f32 %v4933_v0, %v1789_v16 }
  0xe7   :  { %2107 = vmatpush.bf16.msra.mxu1 %v3541_v27  ;;  %v3697_v27 = vor.u32 %v4475_v15, %v3696_v14  ;;  %v1881_v52 = vpop.f32.mrf.mxu3  ;;  %v4553_v14 = vld [vmem:[#allocation4 + $0x54] sm:$0xf0]  ;;  %v3828_v15 = vld [vmem:[#allocation2 + $0x668] sm:$0xf]  ;;  %v4502_v13 = vld [vmem:[#allocation2 + $0x640] sm:$0xf0] }
  0xe8   :  { %2120 = vmatpush.bf16.msra.mxu2 %v3637_v30  ;;  %v4517_v30 = vld [vmem:[#allocation2 + $0x6b8] sm:$0xf0]  ;;  %v1815_v57 = vadd.f32 %v4935_v7, %v1802_v34  ;;  %v3924_v16 = vld [vmem:[#allocation2 + $0x728] sm:$0xf]  ;;  %v3900_v34 = vld [vmem:[#allocation2 + $0x6f8] sm:$0xf] }
  0xe9   :  { %2133 = vmatpush.bf16.msra.mxu3 %v3733_v35  ;;  %v3397_v35 = vor.u32 %v4400_v19, %v3396_v11  ;;  %v3865_v45 = vor.u32 %v4517_v30, %v3864_v28  ;;  %v3937_v11 = vor.u32 %v4535_v5, %v3936_v3  ;;  %v134_v28 = vld [vmem:[%s5055_s1] sm:$0xff]  ;;  %v3998_v30 = vld [vmem:[#allocation4 + $0x30] sm:$0xf]  ;;  %v4545_v5 = vld [vmem:[#allocation4 + $0x14] sm:$0xf0] }
  0xea   :  { %2095 = vmatpush.bf16.msra.mxu0 %v3433_v42  ;;  %v4472_v42 = vld [vmem:[#allocation2 + $0x550] sm:$0xf0]  ;;  %v1828_v7 = vadd.f32 %v4937_v12, %v1815_v57  ;;  %v3888_v52 = vld [vmem:[#allocation2 + $0x6e0] sm:$0xf]  ;;  %v3982_v3 = vld [vmem:[#allocation4 + $0x10] sm:$0xf] }
  0xeb   :  { %2108 = vmatpush.bf16.msra.mxu1 %v3529_v44  ;;  %v3589_v44 = vor.u32 %v4448_v58, %v3588_v21  ;;  %v3685_v0 = vor.u32 %v4472_v42, %v3684_v40  ;;  %v4529_v21 = vld [vmem:[#allocation2 + $0x718] sm:$0xf0]  ;;  %v4980_v40 = vpack.c.bf16 %v134_v28, %v134_v28  ;;  %v3999_v42 = vor.u32 %v4549_v32, %v3998_v30  ;;  %v4569_v28 = vld [vmem:[#allocation4 + $0xd4] sm:$0xf0] }
  0xec   :  { %2121 = vmatpush.bf16.msra.mxu2 %v3625_v46  ;;  %v4030_v46 = vld [vmem:[#allocation4 + $0x70] sm:$0xf]  ;;  %v1841_v12 = vadd.f32 %v4943_v29, %v1828_v7  ;;  %v3913_v31 = vor.u32 %v4529_v21, %v3912_v20  ;;  %v4572_v21 = vld [vmem:[#allocation4 + $0xf4] sm:$0xf] }
  0xed   :  { %2134 = vmatpush.bf16.msra.mxu3 %v3721_v53  ;;  %v2239_v53 = vsel %vm2237_vm0, %v3965_v33, 0  ;;  %v3804_v33 = vld [vmem:[#allocation2 + $0x638] sm:$0xf] }
  0xee   :  { %2096 = vmatpush.bf16.msra.mxu0 %v3421_v59  ;;  %v4031_v59 = vor.u32 %v4557_v48, %v4030_v46  ;;  %v1854_v58 = vadd.f32 %v4945_v37, %v1841_v12  ;;  %v3990_v37 = vld [vmem:[#allocation4 + $0x20] sm:$0xf]  ;;  %v3966_v48 = vld [vmem:[%s5059_s5 + $0x8] sm:$0x10]  ;;  %v3983_v12 = vor.u32 %v4545_v5, %v3982_v3  ;;  %v459_v5 = vperm.slane %v4950_v41, 1 }
  0xef   :  { %2109 = vmatpush.bf16.msra.mxu1 %v3517_v60  ;;  %v3853_v60 = vor.u32 %v4514_v51, %v3852_v50  ;;  %v3792_v50 = vld [vmem:[#allocation2 + $0x620] sm:$0xf]  ;;  %v4499_v51 = vld [vmem:[#allocation2 + $0x628] sm:$0xf0] }
  0xf0   :  { %2122 = vmatpush.bf16.msra.mxu2 %v3613_v63  ;;  %v4555_v63 = vld [vmem:[#allocation4 + $0x64] sm:$0xf0] }
  0xf1   :  { %2135 = vmatpush.bf16.msra.mxu3 %v3709_v9  ;;  %v4023_v8 = vor.u32 %v4555_v63, %v4022_v61  ;;  %v3841_v9 = vor.u32 %v4511_v2, %v3840_v1  ;;  %v3793_v2 = vor.u32 %v4499_v51, %v3792_v50  ;;  %v4568_v51 = vld [vmem:[#allocation4 + $0xd4] sm:$0xf] }
  0xf2   :  { %2097 = vmatpush.bf16.msra.mxu0 %v3409_v17  ;;  %v4532_v17 = vld [vmem:[#allocation2 + $0x730] sm:$0xf0] }
  0xf3   :  { %2110 = vmatpush.bf16.msra.mxu1 %v3505_v18  ;;  %v4006_v18 = vld [vmem:[#allocation4 + $0x40] sm:$0xf]  ;;  %v3925_v6 = vor.u32 %v4532_v17, %v3924_v16  ;;  %v4032_v16 = vld [vmem:[#allocation4 + $0x78] sm:$0xf0] }
  0xf4   :  { %2123 = vmatpush.bf16.msra.mxu2 %v3601_v24  ;;  %v3816_v24 = vld [vmem:[#allocation2 + $0x650] sm:$0xf]  ;;  %v4007_v29 = vor.u32 %v4551_v23, %v4006_v18  ;;  %v4543_v23 = vld [vmem:[#allocation4 + $0x4] sm:$0xf0] }
  0xf5   :  { %2136 = vmatpush.bf16.msra.mxu3 %v3697_v27  ;;  %v3817_v27 = vor.u32 %v4505_v25, %v3816_v24  ;;  %v4554_v25 = vld [vmem:[#allocation4 + $0x64] sm:$0xf] }
  0xf6   :  { %2098 = vmatpush.bf16.msra.mxu0 %v3397_v35  ;;  %v1892_v19 = vpop.f32.mrf.mxu0  ;;  %v4526_v35 = vld [vmem:[#allocation2 + $0x700] sm:$0xf0] }
  0xf7   :  { %2111 = vmatpush.bf16.msra.mxu1 %v3493_v38  ;;  %v1867_v38 = vadd.f32 %v4952_v54, %v1854_v58  ;;  %v3901_v54 = vor.u32 %v4526_v35, %v3900_v34  ;;  %v4096_v58 = vld [vmem:[#allocation4 + $0xf8] sm:$0xf0]  ;;  %v4552_v35 = vld [vmem:[#allocation4 + $0x54] sm:$0xf] }
  0xf8   :  { %2124 = vmatpush.bf16.msra.mxu2 %v3589_v44  ;;  %v3805_v44 = vor.u32 %v4502_v13, %v3804_v33  ;;  %v4099_v32 = vor.u32 %v4572_v21, %v4096_v58  ;;  %v4070_v33 = vld [vmem:[#allocation4 + $0xc0] sm:$0xf]  ;;  %v4567_v13 = vld [vmem:[#allocation4 + $0xc4] sm:$0xf0] }
  0xf9   :  { %2137 = vmatpush.bf16.msra.mxu3 %v3685_v0  ;;  %2099 = vmatmul.bf16.vlgmr.msra.gmra.mxu0 %v4900_v36  ;;  %v4508_v36 = vld [vmem:[#allocation2 + $0x670] sm:$0xf0]  ;;  %v1880_v61 = vadd.f32 %v4955_v4, %v1867_v38  ;;  %v4570_v38 = vld [vmem:[#allocation4 + $0xe4] sm:$0xf] }
  0xfa   :  { %2143 = vmatpush.bf16.msrb.mxu0 %v3865_v45  ;;  %2112 = vmatmul.bf16.vlgmr.msra.gmra.mxu1 %v4904_v43  ;;  %v3829_v43 = vor.u32 %v4508_v36, %v3828_v15  ;;  %v4547_v45 = vld [vmem:[#allocation4 + $0x24] sm:$0xf0]  ;;  %v4520_v4 = vld [vmem:[#allocation2 + $0x6d0] sm:$0xf0] }
  0xfb   :  { %2156 = vmatpush.bf16.msrb.mxu1 %v3961_v47  ;;  %2125 = vmatmul.bf16.vlgmr.msra.gmra.mxu2 %v4902_v39  ;;  %v4015_v39 = vor.u32 %v4553_v14, %v4014_v10  ;;  %v4590_v47 = vld [vmem:[%s5059_s5 + $0x4] sm:$0xf]  ;;  %v3991_v1 = vor.u32 %v4547_v45, %v3990_v37  ;;  %v1893_v7 = vadd.f32 %v1892_v19, %v1880_v61  ;;  %v4496_v10 = vld [vmem:[#allocation2 + $0x610] sm:$0xf0]  ;;  %v4086_v14 = vld [vmem:[#allocation4 + $0xe0] sm:$0xf] }
  0xfc   :  { %2251 = vmatpush.bf16.msrb.mxu2 %v2239_v53  ;;  %2138 = vmatmul.bf16.vlgmr.msra.gmra.mxu3 %v4907_v49  ;;  %v4973_v49 = vpop.f32.mrf.mxu1  ;;  %v3969_v0 = vor.u32 %v4590_v47, %v3966_v48  ;;  %v4571_v15 = vld [vmem:[#allocation4 + $0xe4] sm:$0xf0]  ;;  %v4556_v36 = vld [vmem:[#allocation4 + $0x74] sm:$0xf]  ;;  %v4088_v37 = vld [vmem:[#allocation4 + $0xe8] sm:$0xf0] }
  0xfd   :  { %v4087_v17 = vor.u32 %v4571_v15, %v4086_v14  ;;  %v1906_v18 = vadd.f32 %v4973_v49, %v1893_v7  ;;  %v4035_v24 = vor.u32 %v4556_v36, %v4032_v16  ;;  %v4062_v45 = vld [vmem:[#allocation4 + $0xb0] sm:$0xf]  ;;  %v4565_v47 = vld [vmem:[#allocation4 + $0xb4] sm:$0xf0]  ;;  %v4072_v61 = vld [vmem:[#allocation4 + $0xc8] sm:$0xf0] }
  0xfe   :  { %2144 = vmatpush.bf16.msrb.mxu0 %v3853_v60  ;;  %v4982_v46 = vpop.f32.mrf.mxu2  ;;  %v1894_v53 = vpop.f32.mrf.mxu0  ;;  %v4573_v60 = vld [vmem:[#allocation4 + $0xf4] sm:$0xf0]  ;;  %v4046_v14 = vld [vmem:[#allocation4 + $0x90] sm:$0xf] }
  0xff   :  { %2157 = vmatpush.bf16.msrb.mxu1 %v3949_v62  ;;  %v4990_v57 = vpop.f32.mrf.mxu3  ;;  %v2242_v62 = vsel %vm2237_vm0, %v3969_v0, 0  ;;  %v4063_v53 = vor.u32 %v4565_v47, %v4062_v45  ;;  %v4550_v0 = vld [vmem:[#allocation4 + $0x44] sm:$0xf]  ;;  %v4561_v15 = vld [vmem:[#allocation4 + $0x94] sm:$0xf0]  ;;  %v1919_v16 = vadd.f32 %v4982_v46, %v459_v5 }
 0x100   :  { %2510 = vmatpush.bf16.msra.mxu2 %v4031_v59  ;;  %v4094_v59 = vld [vmem:[#allocation4 + $0xf0] sm:$0xf]  ;;  %2264 = vmatpush.bf16.msrb.mxu3 %v2242_v62  ;;  %v4000_v62 = vld [vmem:[#allocation4 + $0x38] sm:$0xf0]  ;;  %v4047_v36 = vor.u32 %v4561_v15, %v4046_v14  ;;  %v4152_v14 = vld [vmem:[#allocation4 + $0x168] sm:$0xf0] }
 0x101   :  { %v4095_v63 = vor.u32 %v4573_v60, %v4094_v59  ;;  %v4566_v60 = vld [vmem:[#allocation4 + $0xc4] sm:$0xf]  ;;  %v4160_v5 = vld [vmem:[#allocation4 + $0x178] sm:$0xf0] }
 0x102   :  { %2145 = vmatpush.bf16.msrb.mxu0 %v3841_v9  ;;  %v3780_v9 = vld [vmem:[#allocation2 + $0x608] sm:$0xf]  ;;  %v4075_v7 = vor.u32 %v4566_v60, %v4072_v61 }
 0x103   :  { %2158 = vmatpush.bf16.msrb.mxu1 %v3937_v11  ;;  %v3876_v11 = vld [vmem:[#allocation2 + $0x6c8] sm:$0xf] }
 0x104   :  { %2511 = vmatpush.bf16.msra.mxu2 %v4023_v8  ;;  %v1907_v56 = vpop.f32.mrf.mxu1  ;;  %v3889_v8 = vor.u32 %v4523_v55, %v3888_v52  ;;  %2523 = vmatpush.bf16.msra.mxu3 %v4095_v63  ;;  %v3877_v19 = vor.u32 %v4520_v4, %v3876_v11  ;;  %v4080_v52 = vld [vmem:[#allocation4 + $0xd8] sm:$0xf0]  ;;  %v4054_v63 = vld [vmem:[#allocation4 + $0xa0] sm:$0xf]  ;;  %v3992_v4 = vld [vmem:[#allocation4 + $0x28] sm:$0xf0] }
 0x105   :  { %v4083_v55 = vor.u32 %v4568_v51, %v4080_v52  ;;  %v4064_v11 = vld [vmem:[#allocation4 + $0xb8] sm:$0xf0] }
 0x106   :  { %2146 = vmatpush.bf16.msrb.mxu0 %v3829_v43  ;;  %v1920_v43 = vpop.f32.mrf.mxu2 }
 0x107   :  { %2159 = vmatpush.bf16.msrb.mxu1 %v3925_v6  ;;  %v3974_v6 = vld [vmem:[#allocation4] sm:$0xf]  ;;  %v1933_v20 = vpop.f32.mrf.mxu3  ;;  %v4544_v43 = vld [vmem:[#allocation4 + $0x14] sm:$0xf] }
 0x108   :  { %2512 = vmatpush.bf16.msra.mxu2 %v4015_v39  ;;  %v3781_v39 = vor.u32 %v4496_v10, %v3780_v9  ;;  %2524 = vmatpush.bf16.msra.mxu3 %v4087_v17  ;;  %v3975_v30 = vor.u32 %v4543_v23, %v3974_v6  ;;  %v4546_v9 = vld [vmem:[#allocation4 + $0x24] sm:$0xf]  ;;  %v4564_v10 = vld [vmem:[#allocation4 + $0xb4] sm:$0xf]  ;;  %v4056_v6 = vld [vmem:[#allocation4 + $0xa8] sm:$0xf0] }
 0x109   :  { %v3984_v23 = vld [vmem:[#allocation4 + $0x18] sm:$0xf0] }
 0x10a   :  { %2147 = vmatpush.bf16.msrb.mxu0 %v3817_v27  ;;  %v4078_v27 = vld [vmem:[#allocation4 + $0xd0] sm:$0xf] }
 0x10b   :  { %2160 = vmatpush.bf16.msrb.mxu1 %v3913_v31  ;;  %3970 = vmatmul.msk.bf16.vlgmr.msrb.gmra.mxu2 %vm2233_vm1, %v4980_v40  ;;  %v4079_v49 = vor.u32 %v4569_v28, %v4078_v27  ;;  %v2169_v31 = vmax.f32 %v1906_v18, 0.0  ;;  %v3987_v27 = vor.u32 %v4544_v43, %v3984_v23  ;;  %v4560_v28 = vld [vmem:[#allocation4 + $0x94] sm:$0xf]  ;;  %v4134_v23 = vld [vmem:[#allocation4 + $0x140] sm:$0xf] }
 0x10c   :  { %2513 = vmatpush.bf16.msra.mxu2 %v4007_v29  ;;  %3971 = vmatmul.msk.bf16.vlgmr.msrb.gmra.mxu3 %vm2233_vm1, %v4980_v40  ;;  %v4024_v29 = vld [vmem:[#allocation4 + $0x68] sm:$0xf0]  ;;  %v4584_v43 = vld [vmem:[#allocation4 + $0x154] sm:$0xf] }
 0x10d   :  { %v4027_v34 = vor.u32 %v4554_v25, %v4024_v29  ;;  %2525 = vmatpush.bf16.msra.mxu3 %v4079_v49  ;;  %v5001_v48 = vpack.c.bf16 %v2169_v31, %v2169_v31  ;;  %v4559_v25 = vld [vmem:[#allocation4 + $0x84] sm:$0xf0]  ;;  %v1932_v29 = vadd.f32 %v4990_v57, %v1919_v16  ;;  %v4542_v49 = vld [vmem:[#allocation4 + $0x4] sm:$0xf]  ;;  %v3976_v31 = vld [vmem:[#allocation4 + $0x8] sm:$0xf0] }
 0x10e   :  { %2148 = vmatpush.bf16.msrb.mxu0 %v3805_v44  ;;  %v4016_v44 = vld [vmem:[#allocation4 + $0x58] sm:$0xf0] }
 0x10f   :  { %2161 = vmatpush.bf16.msrb.mxu1 %v3901_v54  ;;  %v4091_v54 = vor.u32 %v4570_v38, %v4088_v37  ;;  %v4019_v50 = vor.u32 %v4552_v35, %v4016_v44  ;;  %v4558_v35 = vld [vmem:[#allocation4 + $0x84] sm:$0xf]  ;;  %v4040_v38 = vld [vmem:[#allocation4 + $0x88] sm:$0xf0] }
 0x110   :  { %2514 = vmatpush.bf16.msra.mxu2 %v3999_v42  ;;  %v4071_v42 = vor.u32 %v4567_v13, %v4070_v33  ;;  %v4043_v57 = vor.u32 %v4558_v35, %v4040_v38  ;;  %v4120_v38 = vld [vmem:[#allocation4 + $0x128] sm:$0xf0] }
 0x112   :  { %2149 = vmatpush.bf16.msrb.mxu0 %v3793_v2  ;;  %2526 = vmatpush.bf16.msra.mxu3 %v4071_v42 }
 0x113   :  { %2162 = vmatpush.bf16.msrb.mxu1 %v3889_v8 }
 0x114   :  { %2515 = vmatpush.bf16.msra.mxu2 %v3991_v1  ;;  %v4563_v1 = vld [vmem:[#allocation4 + $0xa4] sm:$0xf0] }
 0x115   :  { %v4055_v3 = vor.u32 %v4563_v1, %v4054_v63  ;;  %v4158_v63 = vld [vmem:[#allocation4 + $0x170] sm:$0xf]  ;;  %v4589_v1 = vld [vmem:[#allocation4 + $0x174] sm:$0xf0] }
 0x116   :  { %2150 = vmatpush.bf16.msrb.mxu0 %v3781_v39  ;;  %v1944_v59 = vpop.f32.mrf.mxu0  ;;  %2527 = vmatpush.bf16.msra.mxu3 %v4063_v53  ;;  %v3995_v39 = vor.u32 %v4546_v9, %v3992_v4  ;;  %v4150_v9 = vld [vmem:[#allocation4 + $0x160] sm:$0xf] }
 0x117   :  { %2163 = vmatpush.bf16.msrb.mxu1 %v3877_v19  ;;  %v1957_v2 = vpop.f32.mrf.mxu1  ;;  %v4562_v19 = vld [vmem:[#allocation4 + $0xa4] sm:$0xf] }
 0x118   :  { %2516 = vmatpush.bf16.msra.mxu2 %v3983_v12  ;;  %v4067_v12 = vor.u32 %v4564_v10, %v4064_v11  ;;  %v4059_v46 = vor.u32 %v4562_v19, %v4056_v6  ;;  %v4587_v10 = vld [vmem:[#allocation4 + $0x164] sm:$0xf0]  ;;  %v4586_v11 = vld [vmem:[#allocation4 + $0x164] sm:$0xf]  ;;  %v4144_v19 = vld [vmem:[#allocation4 + $0x158] sm:$0xf0] }
 0x119   :  { %2151 = vmatmul.bf16.vlgmr.msrb.gmra.mxu0 %v4915_v22  ;;  %v4008_v22 = vld [vmem:[#allocation4 + $0x48] sm:$0xf0]  ;;  %v4151_v4 = vor.u32 %v4587_v10, %v4150_v9  ;;  %v4155_v15 = vor.u32 %v4586_v11, %v4152_v14  ;;  %v4147_v6 = vor.u32 %v4584_v43, %v4144_v19 }
 0x11a   :  { %2164 = vmatmul.bf16.vlgmr.msrb.gmra.mxu1 %v4917_v26  ;;  %v4011_v56 = vor.u32 %v4550_v0, %v4008_v22  ;;  %v4548_v26 = vld [vmem:[#allocation4 + $0x34] sm:$0xf]  ;;  %2528 = vmatpush.bf16.msra.mxu3 %v4055_v3  ;;  %v4159_v3 = vor.u32 %v4589_v1, %v4158_v63 }
 0x11b   :  { %2549 = vmatpush.bf16.msra.mxu1 %v4035_v24  ;;  %v4003_v8 = vor.u32 %v4548_v26, %v4000_v62  ;;  %v4038_v24 = vld [vmem:[#allocation4 + $0x80] sm:$0xf] }
 0x11c   :  { %2517 = vmatpush.bf16.msra.mxu2 %v3975_v30  ;;  %v4039_v58 = vor.u32 %v4559_v25, %v4038_v24  ;;  %v4048_v30 = vld [vmem:[#allocation4 + $0x98] sm:$0xf0]  ;;  %2536 = vmatpush.bf16.msra.mxu0 %v4159_v3  ;;  %v4583_v24 = vld [vmem:[#allocation4 + $0x144] sm:$0xf0]  ;;  %v4582_v25 = vld [vmem:[#allocation4 + $0x144] sm:$0xf] }
 0x11d   :  { %v4051_v13 = vor.u32 %v4560_v28, %v4048_v30  ;;  %v4581_v28 = vld [vmem:[#allocation4 + $0x134] sm:$0xf0]  ;;  %v4580_v30 = vld [vmem:[#allocation4 + $0x134] sm:$0xf] }
 0x11e   :  { %v1970_v17 = vpop.f32.mrf.mxu2  ;;  %v1946_v18 = vpop.f32.mrf.mxu0  ;;  %2529 = vmatpush.bf16.msra.mxu3 %v4047_v36 }
 0x11f   :  { %2550 = vmatpush.bf16.msra.mxu1 %v4027_v34  ;;  %2518 = vmatmul.bf16.vlgmr.msra.gmra.mxu2 %v5001_v48  ;;  %v1983_v20 = vpop.f32.mrf.mxu3  ;;  %v1959_v21 = vpop.f32.mrf.mxu1  ;;  %v3979_v34 = vor.u32 %v4542_v49, %v3976_v31  ;;  %v4128_v31 = vld [vmem:[#allocation4 + $0x138] sm:$0xf0] }
 0x120   :  { %2562 = vmatpush.bf16.msrb.mxu2 %v4099_v32  ;;  %v1945_v32 = vadd.f32 %v1944_v59, %v1932_v29  ;;  %2537 = vmatpush.bf16.msra.mxu0 %v4151_v4  ;;  %v4136_v21 = vld [vmem:[#allocation4 + $0x148] sm:$0xf0] }
 0x121   :  { %v4139_v29 = vor.u32 %v4582_v25, %v4136_v21  ;;  %v4166_v21 = vld [vmem:[%s5062_s8] sm:$0xf] }
 0x122   :  { %2530 = vmatpush.bf16.msra.mxu3 %v4039_v58  ;;  %v1958_v42 = vadd.f32 %v1957_v2, %v1945_v32  ;;  %v4588_v2 = vld [vmem:[#allocation4 + $0x174] sm:$0xf]  ;;  %v4131_v32 = vor.u32 %v4580_v30, %v4128_v31 }
 0x123   :  { %2551 = vmatpush.bf16.msra.mxu1 %v4019_v50  ;;  %v4606_v31 = vld [vmem:[#allocation6 + $0x70] sm:$0xff] }
 0x124   :  { %2563 = vmatpush.bf16.msrb.mxu2 %v4091_v54  ;;  %v1971_v44 = vadd.f32 %v1970_v17, %v1958_v42  ;;  %v460_v42 = vperm.slane %v4950_v41, 2 }
 0x126   :  { %v1972_v33 = vpop.f32.mrf.mxu2  ;;  %v1984_v45 = vadd.f32 %v1983_v20, %v1971_v44  ;;  %v4135_v20 = vor.u32 %v4583_v24, %v4134_v23  ;;  %v4577_v44 = vld [vmem:[#allocation4 + $0x114] sm:$0xf0] }
 0x127   :  { %2552 = vmatpush.bf16.msra.mxu1 %v4011_v56  ;;  %v1985_v37 = vpop.f32.mrf.mxu3  ;;  %v4118_v33 = vld [vmem:[#allocation4 + $0x120] sm:$0xf] }
 0x128   :  { %2564 = vmatpush.bf16.msrb.mxu2 %v4083_v55 }
 0x12b   :  { %2553 = vmatpush.bf16.msra.mxu1 %v4003_v8 }
 0x12c   :  { %2565 = vmatpush.bf16.msrb.mxu2 %v4075_v7  ;;  %v4163_v7 = vor.u32 %v4588_v2, %v4160_v5 }
 0x12e   :  { %2575 = vmatpush.bf16.msrb.mxu3 %v4163_v7 }
 0x12f   :  { %2554 = vmatpush.bf16.msra.mxu1 %v3995_v39  ;;  %v4585_v39 = vld [vmem:[#allocation4 + $0x154] sm:$0xf0] }
 0x130   :  { %2566 = vmatpush.bf16.msrb.mxu2 %v4067_v12  ;;  %v4142_v12 = vld [vmem:[#allocation4 + $0x150] sm:$0xf] }
 0x131   :  { %v4143_v18 = vor.u32 %v4585_v39, %v4142_v12 }
 0x132   :  { %2576 = vmatpush.bf16.msrb.mxu3 %v4155_v15 }
 0x133   :  { %2555 = vmatpush.bf16.msra.mxu1 %v3987_v27  ;;  %2538 = vmatpush.bf16.msra.mxu0 %v4143_v18  ;;  %v4126_v27 = vld [vmem:[#allocation4 + $0x130] sm:$0xf] }
 0x134   :  { %2567 = vmatpush.bf16.msrb.mxu2 %v4059_v46  ;;  %v4127_v49 = vor.u32 %v4581_v28, %v4126_v27  ;;  %v4607_v27 = vld [vmem:[#allocation6 + $0x78] sm:$0xff] }
 0x136   :  { %v1996_v47 = vpop.f32.mrf.mxu0  ;;  %2577 = vmatpush.bf16.msrb.mxu3 %v4147_v6 }
 0x137   :  { %2556 = vmatpush.bf16.msra.mxu1 %v3979_v34  ;;  %v1997_v54 = vadd.f32 %v1996_v47, %v1984_v45  ;;  %v2009_v50 = vpop.f32.mrf.mxu1  ;;  %2539 = vmatpush.bf16.msra.mxu0 %v4135_v20  ;;  %v4578_v34 = vld [vmem:[#allocation4 + $0x124] sm:$0xf]  ;;  %v4576_v45 = vld [vmem:[#allocation4 + $0x114] sm:$0xf]  ;;  %v4599_v20 = vld [vmem:[#allocation6 + $0x38] sm:$0xff] }
 0x138   :  { %2568 = vmatpush.bf16.msrb.mxu2 %v4051_v13  ;;  %v4579_v13 = vld [vmem:[#allocation4 + $0x124] sm:$0xf0]  ;;  %v4123_v37 = vor.u32 %v4578_v34, %v4120_v38  ;;  %v4604_v34 = vld [vmem:[#allocation6 + $0x60] sm:$0xff] }
 0x139   :  { %v2010_v51 = vadd.f32 %v2009_v50, %v1997_v54  ;;  %v4119_v35 = vor.u32 %v4579_v13, %v4118_v33  ;;  %v4112_v54 = vld [vmem:[#allocation4 + $0x118] sm:$0xf0]  ;;  %v4605_v33 = vld [vmem:[#allocation6 + $0x68] sm:$0xff] }
 0x13a   :  { %2557 = vmatmul.bf16.vlgmr.msra.gmra.mxu1 %v5001_v48  ;;  %2578 = vmatpush.bf16.msrb.mxu3 %v4139_v29  ;;  %v4115_v50 = vor.u32 %v4576_v45, %v4112_v54  ;;  %v4598_v29 = vld [vmem:[#allocation6 + $0x30] sm:$0xff]  ;;  %v4595_v13 = vld [vmem:[#allocation6 + $0x18] sm:$0xff]  ;;  %v4593_v54 = vld [vmem:[#allocation6 + $0x8] sm:$0xff] }
 0x13b   :  { %2540 = vmatpush.bf16.msra.mxu0 %v4127_v49  ;;  %2751 = vmatpush.bf16.msrb.mxu1 %v4599_v20  ;;  %v4597_v49 = vld [vmem:[#allocation6 + $0x28] sm:$0xff]  ;;  %v4637_v20 = vld [vmem:[%s5063_s9] ss:$0 sm:$0xff] }
 0x13c   :  { %2569 = vmatpush.bf16.msrb.mxu2 %v4043_v57  ;;  %v4110_v57 = vld [vmem:[#allocation4 + $0x110] sm:$0xf] }
 0x13d   :  { %v4111_v47 = vor.u32 %v4577_v44, %v4110_v57 }
 0x13e   :  { %v2022_v52 = vpop.f32.mrf.mxu2  ;;  %v1998_v22 = vpop.f32.mrf.mxu0  ;;  %2579 = vmatpush.bf16.msrb.mxu3 %v4131_v32  ;;  %v4596_v32 = vld [vmem:[#allocation6 + $0x20] sm:$0xff] }
 0x13f   :  { %v2023_v53 = vadd.f32 %v2022_v52, %v2010_v51  ;;  %v2035_v0 = vpop.f32.mrf.mxu3  ;;  %v2011_v56 = vpop.f32.mrf.mxu1  ;;  %2541 = vmatpush.bf16.msra.mxu0 %v4119_v35  ;;  %v4575_v22 = vld [vmem:[#allocation4 + $0x104] sm:$0xf0]  ;;  %2752 = vmatpush.bf16.msrb.mxu1 %v4598_v29  ;;  %v4594_v35 = vld [vmem:[#allocation6 + $0x10] sm:$0xff] }
 0x141   :  { %v2036_v55 = vadd.f32 %v2035_v0, %v2023_v53  ;;  %v4102_v0 = vld [vmem:[#allocation4 + $0x100] sm:$0xf] }
 0x142   :  { %2580 = vmatpush.bf16.msrb.mxu3 %v4123_v37  ;;  %v4103_v56 = vor.u32 %v4575_v22, %v4102_v0  ;;  %v2588_v0 = vld [vmem:[%s5060_s6] sm:$0x3] }
 0x143   :  { %v2170_v26 = vmax.f32 %v2036_v55, 0.0  ;;  %2542 = vmatpush.bf16.msra.mxu0 %v4111_v47  ;;  %v4574_v55 = vld [vmem:[#allocation4 + $0x104] sm:$0xf]  ;;  %2753 = vmatpush.bf16.msrb.mxu1 %v4597_v49  ;;  %v4603_v47 = vld [vmem:[#allocation6 + $0x58] sm:$0xff]  ;;  %v2590_v22 = vperm.slane %v2588_v0, 0 }
 0x145   :  { %v2173_v59 = vpack.c.bf16 %v2170_v26, %v2170_v26  ;;  %v4104_v26 = vld [vmem:[#allocation4 + $0x108] sm:$0xf0] }
 0x146   :  { %v2024_v60 = vpop.f32.mrf.mxu2  ;;  %2581 = vmatpush.bf16.msrb.mxu3 %v4115_v50  ;;  %v4107_v41 = vor.u32 %v4574_v55, %v4104_v26  ;;  %v4602_v50 = vld [vmem:[#allocation6 + $0x50] sm:$0xff]  ;;  %v4616_v26 = vld [vmem:[#allocation7 + $0x38] sm:$0xff] }
 0x147   :  { %2531 = vmatmul.bf16.vlgmr.msra.gmra.mxu3 %v2173_v59  ;;  %2570 = vmatmul.bf16.vlgmr.msrb.gmra.mxu2 %v2173_v59  ;;  %v2037_v61 = vpop.f32.mrf.mxu3 }
 0x148   :  { %2543 = vmatpush.bf16.msra.mxu0 %v4103_v56  ;;  %2754 = vmatpush.bf16.msrb.mxu1 %v4596_v32  ;;  %v4619_v32 = vld [vmem:[#allocation9 + $0x8] sm:$0xff] }
 0x14a   :  { %2582 = vmatpush.bf16.msrb.mxu3 %v4107_v41 }
 0x14c   :  { %2755 = vmatpush.bf16.msrb.mxu1 %v4595_v13  ;;  %v4638_v13 = vld [vmem:[%s5066_s12] ss:$0 sm:$0xff] }
 0x14e   :  { %2871 = vmatpush.bf16.msra.mxu3 %v4616_v26 }
 0x150   :  { %2756 = vmatpush.bf16.msrb.mxu1 %v4594_v35 }
 0x154   :  { %2757 = vmatpush.bf16.msrb.mxu1 %v4593_v54 }
 0x156   :  { %v5008_v62 = vpop.f32.mrf.mxu0 }
 0x157   :  { %v5010_v48 = vpop.f32.mrf.mxu1  ;;  %v2049_v51 = vadd.f32 %v5008_v62, %v460_v42 }
 0x159   :  { %v2062_v59 = vadd.f32 %v5010_v48, %v2049_v51  ;;  %v4592_v51 = vld [vmem:[#allocation6] sm:$0xff] }
 0x15a   :  { %2758 = vmatpush.bf16.msrb.mxu1 %v4592_v51 }
 0x15e   :  { %v5012_v8 = vpop.f32.mrf.mxu2  ;;  %v2050_v16 = vpop.f32.mrf.mxu0 }
 0x15f   :  { %v5014_v36 = vpop.f32.mrf.mxu3  ;;  %v2063_v17 = vpop.f32.mrf.mxu1  ;;  %v2075_v61 = vadd.f32 %v5012_v8, %v2062_v59  ;;  %v4615_v59 = vld [vmem:[#allocation7 + $0x30] sm:$0xff] }
 0x160   :  { %2872 = vmatpush.bf16.msra.mxu3 %v4615_v59 }
 0x161   :  { %v2088_v2 = vadd.f32 %v5014_v36, %v2075_v61  ;;  %v2591_v61 = vperm.slane %v2588_v0, 1 }
 0x166   :  { %v2076_v58 = vpop.f32.mrf.mxu2 }
 0x167   :  { %v2089_v46 = vpop.f32.mrf.mxu3  ;;  %v4608_v58 = vld [vmem:[%s5062_s8] sm:$0x10] }
 0x168   :  { %v4167_v46 = vor.u32 %v4608_v58, %v4166_v21 }
 0x16a   :  { %v2640_v30 = vsel %vm2237_vm0, %v4167_v46, 0 }
 0x16b   :  { %2649 = vmatpush.bf16.msrb.mxu0 %v2640_v30 }
 0x176   :  { %v2100_v52 = vpop.f32.mrf.mxu0 }
 0x177   :  { %v2113_v53 = vpop.f32.mrf.mxu1  ;;  %v2101_v5 = vadd.f32 %v2100_v52, %v2088_v2  ;;  %v4601_v52 = vld [vmem:[#allocation6 + $0x48] sm:$0xff] }
 0x179   :  { %v2114_v9 = vadd.f32 %v2113_v53, %v2101_v5  ;;  %v4600_v53 = vld [vmem:[#allocation6 + $0x40] sm:$0xff]  ;;  %v4614_v5 = vld [vmem:[#allocation7 + $0x28] sm:$0xff] }
 0x17a   :  { %2873 = vmatpush.bf16.msra.mxu3 %v4614_v5 }
 0x17e   :  { %v2126_v60 = vpop.f32.mrf.mxu2  ;;  %v2102_v63 = vpop.f32.mrf.mxu0 }
 0x17f   :  { %v2139_v1 = vpop.f32.mrf.mxu3  ;;  %v2115_v62 = vpop.f32.mrf.mxu1  ;;  %v2127_v11 = vadd.f32 %v2126_v60, %v2114_v9  ;;  %v4617_v9 = vld [vmem:[%s5065_s11] sm:$0x10] }
 0x181   :  { %v2140_v4 = vadd.f32 %v2139_v1, %v2127_v11  ;;  %v4613_v11 = vld [vmem:[#allocation7 + $0x20] sm:$0xff] }
 0x182   :  { %2874 = vmatpush.bf16.msra.mxu3 %v4613_v11 }
 0x186   :  { %v2128_v3 = vpop.f32.mrf.mxu2 }
 0x187   :  { %v2141_v7 = vpop.f32.mrf.mxu3 }
 0x188   :  { %v4235_v7 = vld [vmem:[%s5065_s11] sm:$0xf] }
 0x18e   :  { %v2253_v10 = vpop.f32.mrf.mxu2 }
 0x18f   :  { %v2266_v15 = vpop.f32.mrf.mxu3 }
 0x196   :  { %v2152_v14 = vpop.f32.mrf.mxu0  ;;  %v2255_v17 = vpop.f32.mrf.mxu2 }
 0x197   :  { %v2153_v48 = vadd.f32 %v2152_v14, %v2140_v4  ;;  %v2165_v16 = vpop.f32.mrf.mxu1  ;;  %v2268_v18 = vpop.f32.mrf.mxu3  ;;  %v4236_v4 = vor.u32 %v4617_v9, %v4235_v7 }
 0x198   :  { %v4625_v18 = vld [vmem:[#allocation9 + $0x38] sm:$0xff] }
 0x199   :  { %v2166_v12 = vadd.f32 %v2165_v16, %v2153_v48  ;;  %2959 = vmatpush.bf16.msra.mxu1 %v4625_v18 }
 0x19b   :  { %v2171_v39 = vmax.f32 %v2166_v12, 0.0  ;;  %v4612_v12 = vld [vmem:[#allocation7 + $0x18] sm:$0xff] }
 0x19c   :  { %2875 = vmatpush.bf16.msra.mxu3 %v4612_v12 }
 0x19d   :  { %v2174_v8 = vpack.c.bf16 %v2171_v39, %v2171_v39  ;;  %v4611_v39 = vld [vmem:[#allocation7 + $0x10] sm:$0xff] }
 0x19e   :  { %v2154_v43 = vpop.f32.mrf.mxu0 }
 0x19f   :  { %v2167_v19 = vpop.f32.mrf.mxu1  ;;  %2544 = vmatmul.bf16.vlgmr.msra.gmra.mxu0 %v2174_v8  ;;  %2583 = vmatmul.bf16.vlgmr.msrb.gmra.mxu3 %v2174_v8  ;;  %v4610_v8 = vld [vmem:[#allocation7 + $0x8] sm:$0xff]  ;;  %v4609_v43 = vld [vmem:[#allocation7] sm:$0xff] }
 0x1a0   :  { %2764 = vmatpush.bf16.msra.mxu0 %v4607_v27  ;;  %2876 = vmatpush.bf16.msra.mxu3 %v4611_v39  ;;  %v4624_v19 = vld [vmem:[#allocation9 + $0x30] sm:$0xff] }
 0x1a1   :  { %2960 = vmatpush.bf16.msra.mxu1 %v4624_v19 }
 0x1a2   :  { %v2519_v36 = vpop.f32.mrf.mxu2 }
 0x1a3   :  { %v2520_v6 = vadd.f32 %v2519_v36, %v2253_v10  ;;  %v4623_v36 = vld [vmem:[#allocation9 + $0x28] sm:$0xff] }
 0x1a4   :  { %2765 = vmatpush.bf16.msra.mxu0 %v4606_v31  ;;  %2877 = vmatpush.bf16.msra.mxu3 %v4610_v8 }
 0x1a5   :  { %2961 = vmatpush.bf16.msra.mxu1 %v4623_v36 }
 0x1a8   :  { %2766 = vmatpush.bf16.msra.mxu0 %v4605_v33  ;;  %2878 = vmatpush.bf16.msra.mxu3 %v4609_v43  ;;  %v4618_v33 = vld [vmem:[#allocation9] sm:$0xff] }
 0x1aa   :  { %v2521_v23 = vpop.f32.mrf.mxu2 }
 0x1ab   :  { %v4621_v23 = vld [vmem:[#allocation9 + $0x18] sm:$0xff] }
 0x1ac   :  { %2767 = vmatpush.bf16.msra.mxu0 %v4604_v34 }
 0x1af   :  { %4168 = vmatmul.msk.bf16.vlgmr.msrb.gmra.mxu0 %vm2233_vm1, %v4980_v40 }
 0x1b0   :  { %2768 = vmatpush.bf16.msra.mxu0 %v4603_v47 }
 0x1b4   :  { %2769 = vmatpush.bf16.msra.mxu0 %v4602_v50 }
 0x1b7   :  { %v2558_v24 = vpop.f32.mrf.mxu1 }
 0x1b8   :  { %v2559_v25 = vadd.f32 %v2558_v24, %v2266_v15  ;;  %2770 = vmatpush.bf16.msra.mxu0 %v4601_v52  ;;  %v2808_v15 = vsel %vm2237_vm0, %v4236_v4, 0  ;;  %v4620_v24 = vld [vmem:[#allocation9 + $0x10] sm:$0xff] }
 0x1b9   :  { %2817 = vmatpush.bf16.msra.mxu2 %v2808_v15 }
 0x1bc   :  { %2771 = vmatpush.bf16.msra.mxu0 %v4600_v53  ;;  %4237 = vmatmul.msk.bf16.vlgmr.msra.gmra.mxu2 %vm2233_vm1, %v4980_v40 }
 0x1bf   :  { %v2560_v28 = vpop.f32.mrf.mxu1 }
 0x1ca   :  { %v2532_v38 = vpop.f32.mrf.mxu3  ;;  %v2571_v37 = vpop.f32.mrf.mxu2 }
 0x1cb   :  { %v2533_v42 = vadd.f32 %v2532_v38, %v2520_v6  ;;  %v2572_v57 = vadd.f32 %v2571_v37, %v2559_v25  ;;  %v4622_v6 = vld [vmem:[#allocation9 + $0x20] sm:$0xff] }
 0x1cc   :  { %2962 = vmatpush.bf16.msra.mxu1 %v4622_v6 }
 0x1d0   :  { %2963 = vmatpush.bf16.msra.mxu1 %v4621_v23 }
 0x1d2   :  { %v2534_v44 = vpop.f32.mrf.mxu3  ;;  %v2573_v45 = vpop.f32.mrf.mxu2 }
 0x1d3   :  { %v4639_v44 = vld [vmem:[%s5068_s14] ss:$0 sm:$0xff] }
 0x1d4   :  { %2964 = vmatpush.bf16.msra.mxu1 %v4620_v24 }
 0x1d8   :  { %2965 = vmatpush.bf16.msra.mxu1 %v4619_v32 }
 0x1dc   :  { %2966 = vmatpush.bf16.msra.mxu1 %v4618_v33 }
 0x21c   :  { %v2545_v55 = vpop.f32.mrf.mxu0 }
 0x21d   :  { %v2546_v56 = vadd.f32 %v2545_v55, %v2533_v42 }
 0x21f   :  { %v2594_v41 = vadd.f32 %v2590_v22, %v2546_v56 }
 0x221   :  { %v2596_v60 = vmax.f32 %v2594_v41, 0.0 }
 0x222   :  { %v2584_v63 = vpop.f32.mrf.mxu3 }
 0x223   :  { %v2598_v1 = vpack.c.bf16 %v2596_v60, %v2596_v60  ;;  %v2585_v62 = vadd.f32 %v2584_v63, %v2572_v57 }
 0x224   :  { %v2547_v2 = vpop.f32.mrf.mxu0 }
 0x225   :  { %v2595_v3 = vadd.f32 %v2591_v61, %v2585_v62  ;;  %2759 = vmatmul.bf16.vlgmr.msrb.gmra.mxu1 %v2598_v1 }
 0x227   :  { %v2597_v10 = vmax.f32 %v2595_v3, 0.0 }
 0x229   :  { %v2599_v14 = vpack.c.bf16 %v2597_v10, %v2597_v10 }
 0x22a   :  { %v2586_v48 = vpop.f32.mrf.mxu3 }
 0x22b   :  { %2772 = vmatmul.bf16.vlgmr.msra.gmra.mxu0 %v2599_v14 }
 0x22c   :  { %v2651_v16 = vpop.f32.mrf.mxu0 }
 0x234   :  { %v2653_v17 = vpop.f32.mrf.mxu0 }
 0x23f   :  { %v2819_v49 = vpop.f32.mrf.mxu2 }
 0x247   :  { %v2821_v31 = vpop.f32.mrf.mxu2 }
 0x2a2   :  { %v2760_v40 = vpop.f32.mrf.mxu1 }
 0x2a3   :  { %v2761_v25 = vadd.f32 %v2760_v40, %v2651_v16 }
 0x2a8   :  { %v2773_v21 = vpop.f32.mrf.mxu0 }
 0x2a9   :  { %v2774_v58 = vadd.f32 %v2773_v21, %v2761_v25 }
 0x2aa   :  { %v2762_v29 = vpop.f32.mrf.mxu1 }
 0x2ab   :  { %v2781_v46 = vadd.f32 %v4637_v20, %v2774_v58 }
 0x2ad   :  { %v2782_v27 = vmax.f32 %v2781_v46, 0.0 }
 0x2af   :  { %v2783_v28 = vpack.c.bf16 %v2782_v27, %v2782_v27 }
 0x2b0   :  { %v2775_v30 = vpop.f32.mrf.mxu0 }
 0x2b1   :  { %2879 = vmatmul.bf16.vlgmr.msra.gmra.mxu3 %v2783_v28 }
 0x334   :  { %v2880_v34 = vpop.f32.mrf.mxu3 }
 0x335   :  { %v2881_v35 = vadd.f32 %v2880_v34, %v2819_v49 }
 0x337   :  { %v2888_v38 = vadd.f32 %v4638_v13, %v2881_v35 }
 0x339   :  { %v2889_v37 = vmax.f32 %v2888_v38, 0.0 }
 0x33b   :  { %v2890_v42 = vpack.c.bf16 %v2889_v37, %v2889_v37 }
 0x33c   :  { %v2882_v57 = vpop.f32.mrf.mxu3 }
 0x33d   :  { %2967 = vmatmul.bf16.vlgmr.msra.gmra.mxu1 %v2890_v42 }
 0x3ba   :  { %v2968_v45 = vpop.f32.mrf.mxu1 }
 0x3bb   :  { %v2969_v47 = vadd.f32 %v4639_v44, %v2968_v45 }
 0x3bd   :  { %2972 = vmax.xlane.f32.xlu0 %v2969_v47 }
 0x3c2   :  { %v2970_v54 = vpop.f32.mrf.mxu1 }
 0x430   :  { %v2973_v50 = vpop.xlane.xlu0 %2972 }
 0x431   :  { %v2974_v51 = vsub.f32 %v2969_v47, %v2973_v50 }
 0x433   :  { %v2975_v52 = vmul.f32 1.442695, %v2974_v51 }
 0x435   :  { %4640 = vpow2.f32 %v2975_v52 }
 0x43b   :  { %v4641_v53 = vpop.eup %4640 }
 0x43c   :  { %2977 = vadd.xlane.f32.xlu0 %v4641_v53 }
 0x4af   :  { %v2978_v0 = vpop.xlane.xlu0 %2977 }
 0x4b0   :  { %4642 = vrcp.f32 %v2978_v0  ;;  %v2990_v26 = vand.u32 2147483648, %v2978_v0  ;;  %v2988_v59 = vand.u32 2147483647, %v2978_v0  ;;  %vm2984_vm3 = vweird.f32 %v2978_v0 }
 0x4b2   :  { %v2991_v61 = vor.u32 1.1754944e-38, %v2990_v26  ;;  %vm2989_vm5 = vcmp.eq.f32.partialorder %v2988_v59, 8.507059e+37 }
 0x4b6   :  { %v4643_v22 = vpop.eup %4642 }
 0x4b7   :  { %v2980_v55 = vmul.f32 %v4643_v22, %v2978_v0  ;;  %vm2985_vm2 = vweird.f32 %v4643_v22 }
 0x4b8   :  { %vm2986_vm4 = vmor %vm2984_vm3, %vm2985_vm2 }
 0x4b9   :  { %v2981_v56 = vsub.f32 1.0, %v2980_v55 }
 0x4bb   :  { %v2982_v41 = vmul.f32 %v4643_v22, %v2981_v56 }
 0x4bd   :  { %v2983_v60 = vadd.f32 %v4643_v22, %v2982_v41 }
 0x4bf   :  { %v2987_v63 = vsel %vm2986_vm4, %v4643_v22, %v2983_v60 }
 0x4c0   :  { %v2992_v1 = vsel %vm2989_vm5, %v2991_v61, %v2987_v63 }
 0x4c1   :  { %v2993_v62 = vmul.f32 %v4641_v53, %v2992_v1 }
 0x4c3   :  { %2994 = vst [vmem:[%s5069_s15] sm:$0xff] %v2993_v62 }
 0x4c4   :  { %2999 = vsyncpa [#allocation3], 1 }
 0x4c5   :  { %3000 = vsyncpa [#allocation5], 1 }
 0x4c6   :  { %3001 = vsyncpa [#allocation8], 1 }

</bundles_post_ra>
